<compile_context>
chip_gen: v7x
topology: tpu7x:2x2x1
jax: 0.10.0
libtpu: 0.0.40
codegen_flags: <defaults>
</compile_context>

<pallas_src>
import jax
import jax.numpy as jnp
from jax.experimental import pallas as pl
from jax.experimental.pallas import tpu as pltpu


def _make_kernel(C, Wp, Np, bb, G, out_dtype):
    L = bb * Np          # lanes of real (padded-flat) data per grid step

    def kernel(x_ref, w1_ref, b1_ref, w2_ref, b2_ref, mask_ref, o_ref,
               pad_ref, tap_ref, yf_ref):
        # bf16 copy of the padded input; guard lanes carry the wrapper's real
        # zeros and are never overwritten, so no explicit zeroing is needed.
        pad_ref[...] = x_ref[...].astype(jnp.bfloat16)

        def build_taps():
            # 9 shifted windows -> (9C, L) tap matrix.  Every copy is a
            # lane-dense (C, L) slab; sublane starts are multiples of C.
            for dy in range(3):
                for dx in range(3):
                    k = dy * 3 + dx
                    tap_ref[k * C:(k + 1) * C, :] = \
                        pad_ref[:, pl.ds(dy * Wp + dx, L)]

        # ---- conv1 + folded BN1: one K=9C matmul, f32 accumulation ----------
        build_taps()
        yf_ref[...] = jnp.dot(w1_ref[...], tap_ref[...],
                              preferred_element_type=jnp.float32)
        # ReLU + border-ring mask, written back into the padded-flat scratch so
        # it feeds conv2 with zero extra data movement.
        y1 = jnp.maximum(yf_ref[...] + b1_ref[...], 0.0) * mask_ref[...]
        pad_ref[:, pl.ds(G, L)] = y1.astype(jnp.bfloat16)

        # ---- conv2 + folded BN2 ----------------------------------------------
        build_taps()
        yf_ref[...] = jnp.dot(w2_ref[...], tap_ref[...],
                              preferred_element_type=jnp.float32)

        # ---- residual (exact f32 skip path) + final ReLU ----------------------
        # Output stays padded-flat; the wrapper crops the interior.
        o_ref[...] = jnp.maximum(
            yf_ref[...] + b2_ref[...] + x_ref[:, pl.ds(G, L)], 0.0
        ).astype(out_dtype)

    return kernel


def _pick_bb(B, bb_max):
    """Largest batch-block <= bb_max dividing B, keeping >=2 grid steps when
    possible so a 2-TensorCore chip (v7x) has work for both cores."""
    target = min(bb_max, max(1, B // 2))
    for bb in range(target, 0, -1):
        if B % bb == 0:
            return bb
    return 1


def common_block_forward(x, params, eps=1e-5, bb_max=8, out_dtype=jnp.float32):
    """x: NCHW float32 (B, C, H, W).  Eval-mode forward of CommonBlock."""
    B, C, H, W = x.shape
    O = params["conv1_w"].shape[0]
    assert O == C, "residual add requires in_channel == out_channel (stride=1)"
    assert C % 8 == 0, "channel count must be a multiple of 8 (sublane tiling)"

    Hp, Wp = H + 2, W + 2
    Np = Hp * Wp                  # positions in one zero-padded image
    G = Wp + 1                    # guard so every (dy,dx) tap start is >= 0
    bb = _pick_bb(B, bb_max)      # batch elements per grid step
    nb = B // bb
    L = bb * Np                   # data lanes per grid step
    Ls = L + 2 * G                # data + guard lanes

    def fold_bn(w, gamma, beta, mean, var):
        inv = gamma / jnp.sqrt(var + eps)                          # (O,)
        w_f = w * inv[:, None, None, None]                         # (O, C, 3, 3)
        b_f = (beta - mean * inv).reshape(O, 1).astype(jnp.float32)
        # (O, C, 3, 3) -> (O, 9*C) with column index k*C + c, k = dy*3 + dx.
        w2d = jnp.transpose(w_f, (0, 2, 3, 1)).reshape(O, 9 * C)
        return w2d.astype(jnp.bfloat16), b_f

    w1, b1 = fold_bn(params["conv1_w"], params["bn1_gamma"], params["bn1_beta"],
                     params["bn1_mean"], params["bn1_var"])
    w2, b2 = fold_bn(params["conv2_w"], params["bn2_gamma"], params["bn2_beta"],
                     params["bn2_mean"], params["bn2_var"])

    # Padded-flat f32 input: pad spatially, lay bb images along the lane axis,
    # add guard lanes.  All of this fuses into a single XLA copy.
    xp = jnp.pad(x.astype(jnp.float32), ((0, 0), (0, 0), (1, 1), (1, 1)))
    xp = xp.reshape(nb, bb, C, Np)
    xp = jnp.transpose(xp, (0, 2, 1, 3)).reshape(nb, C, L)
    xp = jnp.pad(xp, ((0, 0), (0, 0), (G, G)))                     # (nb, C, Ls)

    # Interior mask over the padded-flat grid (1 at true image positions,
    # 0 on the zero-padding ring), tiled across the bb batch elements.
    p = jnp.arange(Np, dtype=jnp.int32)
    ii, jj = p // Wp, p % Wp
    m = ((ii >= 1) & (ii <= H) & (jj >= 1) & (jj <= W)).astype(jnp.float32)
    mask = jnp.tile(m, bb).reshape(1, L)

    kernel = _make_kernel(C, Wp, Np, bb, G, out_dtype)

    out = pl.pallas_call(
        kernel,
        out_shape=jax.ShapeDtypeStruct((nb, C, L), out_dtype),
        grid=(nb,),
        in_specs=[
            pl.BlockSpec((None, C, Ls), lambda g: (g, 0, 0)),   # padded-flat x (f32)
            pl.BlockSpec((C, 9 * C), lambda g: (0, 0)),         # folded conv1 weights
            pl.BlockSpec((C, 1), lambda g: (0, 0)),             # folded bn1 bias
            pl.BlockSpec((C, 9 * C), lambda g: (0, 0)),         # folded conv2 weights
            pl.BlockSpec((C, 1), lambda g: (0, 0)),             # folded bn2 bias
            pl.BlockSpec((1, L), lambda g: (0, 0)),             # interior mask
        ],
        out_specs=pl.BlockSpec((None, C, L), lambda g: (g, 0, 0)),
        scratch_shapes=[
            pltpu.VMEM((C, Ls), jnp.bfloat16),                  # padded bf16 acts (x, then y1)
            pltpu.VMEM((9 * C, L), jnp.bfloat16),               # tap matrix
            pltpu.VMEM((C, L), jnp.float32),                    # f32 conv accumulator
        ],
        compiler_params=pltpu.CompilerParams(
            dimension_semantics=("parallel",),
        ),
    )(xp, w1, b1, w2, b2, mask)

    # Crop the interior and restore NCHW.
    out = out.reshape(nb, C, bb, Hp, Wp)
    out = jnp.transpose(out, (0, 2, 1, 3, 4)).reshape(B, C, Hp, Wp)
    return out[:, :, 1:H + 1, 1:W + 1]


def common_block_reference(x, params, eps=1e-5):
    """Pure-JAX f32 reference mirroring the PyTorch forward (eval-mode BN)."""
    def conv3x3(v, w):
        return jax.lax.conv_general_dilated(
            v, w, window_strides=(1, 1), padding=((1, 1), (1, 1)),
            dimension_numbers=("NCHW", "OIHW", "NCHW"))

    def bn(v, g, b, m, s2):
        inv = g / jnp.sqrt(s2 + eps)
        return v * inv[None, :, None, None] + (b - m * inv)[None, :, None, None]

    y = jax.nn.relu(bn(conv3x3(x, params["conv1_w"]),
                       params["bn1_gamma"], params["bn1_beta"],
                       params["bn1_mean"], params["bn1_var"]))
    y = bn(conv3x3(y, params["conv2_w"]),
           params["bn2_gamma"], params["bn2_beta"],
           params["bn2_mean"], params["bn2_var"])
    return jax.nn.relu(y + x)


def make_params(key, C):
    ks = jax.random.split(key, 10)
    f32 = jnp.float32
    fan_in = 9 * C
    return {
        "conv1_w": jax.random.normal(ks[0], (C, C, 3, 3), f32) / jnp.sqrt(fan_in),
        "conv2_w": jax.random.normal(ks[1], (C, C, 3, 3), f32) / jnp.sqrt(fan_in),
        "bn1_gamma": 1.0 + 0.1 * jax.random.normal(ks[2], (C,), f32),
        "bn1_beta": 0.1 * jax.random.normal(ks[3], (C,), f32),
        "bn1_mean": 0.1 * jax.random.normal(ks[4], (C,), f32),
        "bn1_var": 1.0 + 0.1 * jnp.abs(jax.random.normal(ks[5], (C,), f32)),
        "bn2_gamma": 1.0 + 0.1 * jax.random.normal(ks[6], (C,), f32),
        "bn2_beta": 0.1 * jax.random.normal(ks[7], (C,), f32),
        "bn2_mean": 0.1 * jax.random.normal(ks[8], (C,), f32),
        "bn2_var": 1.0 + 0.1 * jnp.abs(jax.random.normal(ks[9], (C,), f32)),
    }


if __name__ == "__main__":
    key = jax.random.PRNGKey(0)
    k_in, k_par = jax.random.split(key)

    B, C, H, W = 2, 32, 16, 16
    x = jax.random.normal(k_in, (B, C, H, W), jnp.float32) * 0.5
    params = make_params(k_par, C)

    out = common_block_forward(x, params)
    out = jax.block_until_ready(out)

    ref = common_block_reference(x, params)
    assert out.shape == (B, C, H, W)
    max_err = float(jnp.max(jnp.abs(out - ref)))
    assert jnp.allclose(out, ref, rtol=2e-2, atol=2e-2), f"max abs err {max_err}"

    print("KERNEL_OK")
</pallas_src>

<mosaic_0001>
module attributes {stable_mosaic.version = 11 : i64} {
  func.func @kernel(%arg0: i32, %arg1: memref<1x32x362xf32, #tpu.memory_space<vmem>>, %arg2: memref<32x288xbf16, #tpu.memory_space<vmem>>, %arg3: memref<32x1xf32, #tpu.memory_space<vmem>>, %arg4: memref<32x288xbf16, #tpu.memory_space<vmem>>, %arg5: memref<32x1xf32, #tpu.memory_space<vmem>>, %arg6: memref<1x324xf32, #tpu.memory_space<vmem>>, %arg7: memref<1x32x324xf32, #tpu.memory_space<vmem>>, %arg8: memref<32x362xbf16, #tpu.memory_space<vmem>>, %arg9: memref<288x324xbf16, #tpu.memory_space<vmem>>, %arg10: memref<32x324xf32, #tpu.memory_space<vmem>>) attributes {dimension_semantics = [#tpu.dimension_semantics<parallel>], iteration_bounds = array<i64: 2>, scalar_prefetch = 0 : i64, scratch_operands = 3 : i64, tpu.core_type = #tpu.core_type<tc>, window_params = [{transform_indices = @transform_0, window_bounds = array<i64: 1, 32, 362>}, {pipeline_mode = #tpu.pipeline_mode<synchronous>, transform_indices = @transform_1, window_bounds = array<i64: 32, 288>}, {pipeline_mode = #tpu.pipeline_mode<synchronous>, transform_indices = @transform_2, window_bounds = array<i64: 32, 1>}, {pipeline_mode = #tpu.pipeline_mode<synchronous>, transform_indices = @transform_3, window_bounds = array<i64: 32, 288>}, {pipeline_mode = #tpu.pipeline_mode<synchronous>, transform_indices = @transform_4, window_bounds = array<i64: 32, 1>}, {pipeline_mode = #tpu.pipeline_mode<synchronous>, transform_indices = @transform_5, window_bounds = array<i64: 1, 324>}, {transform_indices = @transform_6, window_bounds = array<i64: 1, 32, 324>}]} {
    %c0 = arith.constant 0 : index
    %c0_0 = arith.constant 0 : index
    %c0_1 = arith.constant 0 : index
    %0 = vector.load %arg1[%c0, %c0_0, %c0_1] : memref<1x32x362xf32, #tpu.memory_space<vmem>>, vector<1x32x362xf32>
    %1 = vector.shape_cast %0 : vector<1x32x362xf32> to vector<32x362xf32>
    %2 = arith.truncf %1 : vector<32x362xf32> to vector<32x362xbf16>
    %c0_2 = arith.constant 0 : index
    %c0_3 = arith.constant 0 : index
    %3 = vector.load %arg8[%c0_2, %c0_3] : memref<32x362xbf16, #tpu.memory_space<vmem>>, vector<32x362xbf16>
    tpu.vector_store %arg8[%c0_2, %c0_3], %2 {strides = array<i32>} : memref<32x362xbf16, #tpu.memory_space<vmem>>, vector<32x362xbf16>,
    %c0_4 = arith.constant 0 : index
    %c0_5 = arith.constant 0 : index
    %4 = vector.load %arg8[%c0_4, %c0_5] : memref<32x362xbf16, #tpu.memory_space<vmem>>, vector<32x324xbf16>
    %c0_6 = arith.constant 0 : index
    %c0_7 = arith.constant 0 : index
    %5 = vector.load %arg9[%c0_6, %c0_7] : memref<288x324xbf16, #tpu.memory_space<vmem>>, vector<32x324xbf16>
    tpu.vector_store %arg9[%c0_6, %c0_7], %4 {strides = array<i32>} : memref<288x324xbf16, #tpu.memory_space<vmem>>, vector<32x324xbf16>,
    %c0_8 = arith.constant 0 : index
    %c1 = arith.constant 1 : index
    %6 = vector.load %arg8[%c0_8, %c1] : memref<32x362xbf16, #tpu.memory_space<vmem>>, vector<32x324xbf16>
    %c32 = arith.constant 32 : index
    %c0_9 = arith.constant 0 : index
    %7 = vector.load %arg9[%c32, %c0_9] : memref<288x324xbf16, #tpu.memory_space<vmem>>, vector<32x324xbf16>
    tpu.vector_store %arg9[%c32, %c0_9], %6 {strides = array<i32>} : memref<288x324xbf16, #tpu.memory_space<vmem>>, vector<32x324xbf16>,
    %c0_10 = arith.constant 0 : index
    %c2 = arith.constant 2 : index
    %8 = vector.load %arg8[%c0_10, %c2] : memref<32x362xbf16, #tpu.memory_space<vmem>>, vector<32x324xbf16>
    %c64 = arith.constant 64 : index
    %c0_11 = arith.constant 0 : index
    %9 = vector.load %arg9[%c64, %c0_11] : memref<288x324xbf16, #tpu.memory_space<vmem>>, vector<32x324xbf16>
    tpu.vector_store %arg9[%c64, %c0_11], %8 {strides = array<i32>} : memref<288x324xbf16, #tpu.memory_space<vmem>>, vector<32x324xbf16>,
    %c0_12 = arith.constant 0 : index
    %c18 = arith.constant 18 : index
    %10 = vector.load %arg8[%c0_12, %c18] : memref<32x362xbf16, #tpu.memory_space<vmem>>, vector<32x324xbf16>
    %c96 = arith.constant 96 : index
    %c0_13 = arith.constant 0 : index
    %11 = vector.load %arg9[%c96, %c0_13] : memref<288x324xbf16, #tpu.memory_space<vmem>>, vector<32x324xbf16>
    tpu.vector_store %arg9[%c96, %c0_13], %10 {strides = array<i32>} : memref<288x324xbf16, #tpu.memory_space<vmem>>, vector<32x324xbf16>,
    %c0_14 = arith.constant 0 : index
    %c19 = arith.constant 19 : index
    %12 = vector.load %arg8[%c0_14, %c19] : memref<32x362xbf16, #tpu.memory_space<vmem>>, vector<32x324xbf16>
    %c128 = arith.constant 128 : index
    %c0_15 = arith.constant 0 : index
    %13 = vector.load %arg9[%c128, %c0_15] : memref<288x324xbf16, #tpu.memory_space<vmem>>, vector<32x324xbf16>
    tpu.vector_store %arg9[%c128, %c0_15], %12 {strides = array<i32>} : memref<288x324xbf16, #tpu.memory_space<vmem>>, vector<32x324xbf16>,
    %c0_16 = arith.constant 0 : index
    %c20 = arith.constant 20 : index
    %14 = vector.load %arg8[%c0_16, %c20] : memref<32x362xbf16, #tpu.memory_space<vmem>>, vector<32x324xbf16>
    %c160 = arith.constant 160 : index
    %c0_17 = arith.constant 0 : index
    %15 = vector.load %arg9[%c160, %c0_17] : memref<288x324xbf16, #tpu.memory_space<vmem>>, vector<32x324xbf16>
    tpu.vector_store %arg9[%c160, %c0_17], %14 {strides = array<i32>} : memref<288x324xbf16, #tpu.memory_space<vmem>>, vector<32x324xbf16>,
    %c0_18 = arith.constant 0 : index
    %c36 = arith.constant 36 : index
    %16 = vector.load %arg8[%c0_18, %c36] : memref<32x362xbf16, #tpu.memory_space<vmem>>, vector<32x324xbf16>
    %c192 = arith.constant 192 : index
    %c0_19 = arith.constant 0 : index
    %17 = vector.load %arg9[%c192, %c0_19] : memref<288x324xbf16, #tpu.memory_space<vmem>>, vector<32x324xbf16>
    tpu.vector_store %arg9[%c192, %c0_19], %16 {strides = array<i32>} : memref<288x324xbf16, #tpu.memory_space<vmem>>, vector<32x324xbf16>,
    %c0_20 = arith.constant 0 : index
    %c37 = arith.constant 37 : index
    %18 = vector.load %arg8[%c0_20, %c37] : memref<32x362xbf16, #tpu.memory_space<vmem>>, vector<32x324xbf16>
    %c224 = arith.constant 224 : index
    %c0_21 = arith.constant 0 : index
    %19 = vector.load %arg9[%c224, %c0_21] : memref<288x324xbf16, #tpu.memory_space<vmem>>, vector<32x324xbf16>
    tpu.vector_store %arg9[%c224, %c0_21], %18 {strides = array<i32>} : memref<288x324xbf16, #tpu.memory_space<vmem>>, vector<32x324xbf16>,
    %c0_22 = arith.constant 0 : index
    %c38 = arith.constant 38 : index
    %20 = vector.load %arg8[%c0_22, %c38] : memref<32x362xbf16, #tpu.memory_space<vmem>>, vector<32x324xbf16>
    %c256 = arith.constant 256 : index
    %c0_23 = arith.constant 0 : index
    %21 = vector.load %arg9[%c256, %c0_23] : memref<288x324xbf16, #tpu.memory_space<vmem>>, vector<32x324xbf16>
    tpu.vector_store %arg9[%c256, %c0_23], %20 {strides = array<i32>} : memref<288x324xbf16, #tpu.memory_space<vmem>>, vector<32x324xbf16>,
    %c0_24 = arith.constant 0 : index
    %c0_25 = arith.constant 0 : index
    %22 = vector.load %arg2[%c0_24, %c0_25] : memref<32x288xbf16, #tpu.memory_space<vmem>>, vector<32x288xbf16>
    %c0_26 = arith.constant 0 : index
    %c0_27 = arith.constant 0 : index
    %23 = vector.load %arg9[%c0_26, %c0_27] : memref<288x324xbf16, #tpu.memory_space<vmem>>, vector<288x324xbf16>
    %cst = arith.constant dense<0.000000e+00> : vector<32x324xf32>
    %24 = tpu.matmul %22, %23, %cst {dimension_numbers = #tpu.dot_dimension_numbers<[1], [0], [0], [1], [0, 0, 1, 1], [], []>} : vector<32x288xbf16>, vector<288x324xbf16>, vector<32x324xf32> -> vector<32x324xf32>
    %c0_28 = arith.constant 0 : index
    %c0_29 = arith.constant 0 : index
    %25 = vector.load %arg10[%c0_28, %c0_29] : memref<32x324xf32, #tpu.memory_space<vmem>>, vector<32x324xf32>
    tpu.vector_store %arg10[%c0_28, %c0_29], %24 {strides = array<i32>} : memref<32x324xf32, #tpu.memory_space<vmem>>, vector<32x324xf32>,
    %c0_30 = arith.constant 0 : index
    %c0_31 = arith.constant 0 : index
    %26 = vector.load %arg10[%c0_30, %c0_31] : memref<32x324xf32, #tpu.memory_space<vmem>>, vector<32x324xf32>
    %c0_32 = arith.constant 0 : index
    %c0_33 = arith.constant 0 : index
    %27 = vector.load %arg3[%c0_32, %c0_33] : memref<32x1xf32, #tpu.memory_space<vmem>>, vector<32x1xf32>
    %28 = vector.broadcast %27 : vector<32x1xf32> to vector<32x324xf32>
    %29 = arith.addf %26, %28 : vector<32x324xf32>
    %cst_34 = arith.constant 0.000000e+00 : f32
    %30 = vector.broadcast %cst_34 : f32 to vector<32x324xf32>
    %31 = arith.maximumf %29, %30 : vector<32x324xf32>
    %c0_35 = arith.constant 0 : index
    %c0_36 = arith.constant 0 : index
    %32 = vector.load %arg6[%c0_35, %c0_36] : memref<1x324xf32, #tpu.memory_space<vmem>>, vector<1x324xf32>
    %33 = vector.broadcast %32 : vector<1x324xf32> to vector<32x324xf32>
    %34 = arith.mulf %31, %33 : vector<32x324xf32>
    %35 = arith.truncf %34 : vector<32x324xf32> to vector<32x324xbf16>
    %c0_37 = arith.constant 0 : index
    %c19_38 = arith.constant 19 : index
    %36 = vector.load %arg8[%c0_37, %c19_38] : memref<32x362xbf16, #tpu.memory_space<vmem>>, vector<32x324xbf16>
    tpu.vector_store %arg8[%c0_37, %c19_38], %35 {strides = array<i32>} : memref<32x362xbf16, #tpu.memory_space<vmem>>, vector<32x324xbf16>,
    %c0_39 = arith.constant 0 : index
    %c0_40 = arith.constant 0 : index
    %37 = vector.load %arg8[%c0_39, %c0_40] : memref<32x362xbf16, #tpu.memory_space<vmem>>, vector<32x324xbf16>
    %c0_41 = arith.constant 0 : index
    %c0_42 = arith.constant 0 : index
    %38 = vector.load %arg9[%c0_41, %c0_42] : memref<288x324xbf16, #tpu.memory_space<vmem>>, vector<32x324xbf16>
    tpu.vector_store %arg9[%c0_41, %c0_42], %37 {strides = array<i32>} : memref<288x324xbf16, #tpu.memory_space<vmem>>, vector<32x324xbf16>,
    %c0_43 = arith.constant 0 : index
    %c1_44 = arith.constant 1 : index
    %39 = vector.load %arg8[%c0_43, %c1_44] : memref<32x362xbf16, #tpu.memory_space<vmem>>, vector<32x324xbf16>
    %c32_45 = arith.constant 32 : index
    %c0_46 = arith.constant 0 : index
    %40 = vector.load %arg9[%c32_45, %c0_46] : memref<288x324xbf16, #tpu.memory_space<vmem>>, vector<32x324xbf16>
    tpu.vector_store %arg9[%c32_45, %c0_46], %39 {strides = array<i32>} : memref<288x324xbf16, #tpu.memory_space<vmem>>, vector<32x324xbf16>,
    %c0_47 = arith.constant 0 : index
    %c2_48 = arith.constant 2 : index
    %41 = vector.load %arg8[%c0_47, %c2_48] : memref<32x362xbf16, #tpu.memory_space<vmem>>, vector<32x324xbf16>
    %c64_49 = arith.constant 64 : index
    %c0_50 = arith.constant 0 : index
    %42 = vector.load %arg9[%c64_49, %c0_50] : memref<288x324xbf16, #tpu.memory_space<vmem>>, vector<32x324xbf16>
    tpu.vector_store %arg9[%c64_49, %c0_50], %41 {strides = array<i32>} : memref<288x324xbf16, #tpu.memory_space<vmem>>, vector<32x324xbf16>,
    %c0_51 = arith.constant 0 : index
    %c18_52 = arith.constant 18 : index
    %43 = vector.load %arg8[%c0_51, %c18_52] : memref<32x362xbf16, #tpu.memory_space<vmem>>, vector<32x324xbf16>
    %c96_53 = arith.constant 96 : index
    %c0_54 = arith.constant 0 : index
    %44 = vector.load %arg9[%c96_53, %c0_54] : memref<288x324xbf16, #tpu.memory_space<vmem>>, vector<32x324xbf16>
    tpu.vector_store %arg9[%c96_53, %c0_54], %43 {strides = array<i32>} : memref<288x324xbf16, #tpu.memory_space<vmem>>, vector<32x324xbf16>,
    %c0_55 = arith.constant 0 : index
    %c19_56 = arith.constant 19 : index
    %45 = vector.load %arg8[%c0_55, %c19_56] : memref<32x362xbf16, #tpu.memory_space<vmem>>, vector<32x324xbf16>
    %c128_57 = arith.constant 128 : index
    %c0_58 = arith.constant 0 : index
    %46 = vector.load %arg9[%c128_57, %c0_58] : memref<288x324xbf16, #tpu.memory_space<vmem>>, vector<32x324xbf16>
    tpu.vector_store %arg9[%c128_57, %c0_58], %45 {strides = array<i32>} : memref<288x324xbf16, #tpu.memory_space<vmem>>, vector<32x324xbf16>,
    %c0_59 = arith.constant 0 : index
    %c20_60 = arith.constant 20 : index
    %47 = vector.load %arg8[%c0_59, %c20_60] : memref<32x362xbf16, #tpu.memory_space<vmem>>, vector<32x324xbf16>
    %c160_61 = arith.constant 160 : index
    %c0_62 = arith.constant 0 : index
    %48 = vector.load %arg9[%c160_61, %c0_62] : memref<288x324xbf16, #tpu.memory_space<vmem>>, vector<32x324xbf16>
    tpu.vector_store %arg9[%c160_61, %c0_62], %47 {strides = array<i32>} : memref<288x324xbf16, #tpu.memory_space<vmem>>, vector<32x324xbf16>,
    %c0_63 = arith.constant 0 : index
    %c36_64 = arith.constant 36 : index
    %49 = vector.load %arg8[%c0_63, %c36_64] : memref<32x362xbf16, #tpu.memory_space<vmem>>, vector<32x324xbf16>
    %c192_65 = arith.constant 192 : index
    %c0_66 = arith.constant 0 : index
    %50 = vector.load %arg9[%c192_65, %c0_66] : memref<288x324xbf16, #tpu.memory_space<vmem>>, vector<32x324xbf16>
    tpu.vector_store %arg9[%c192_65, %c0_66], %49 {strides = array<i32>} : memref<288x324xbf16, #tpu.memory_space<vmem>>, vector<32x324xbf16>,
    %c0_67 = arith.constant 0 : index
    %c37_68 = arith.constant 37 : index
    %51 = vector.load %arg8[%c0_67, %c37_68] : memref<32x362xbf16, #tpu.memory_space<vmem>>, vector<32x324xbf16>
    %c224_69 = arith.constant 224 : index
    %c0_70 = arith.constant 0 : index
    %52 = vector.load %arg9[%c224_69, %c0_70] : memref<288x324xbf16, #tpu.memory_space<vmem>>, vector<32x324xbf16>
    tpu.vector_store %arg9[%c224_69, %c0_70], %51 {strides = array<i32>} : memref<288x324xbf16, #tpu.memory_space<vmem>>, vector<32x324xbf16>,
    %c0_71 = arith.constant 0 : index
    %c38_72 = arith.constant 38 : index
    %53 = vector.load %arg8[%c0_71, %c38_72] : memref<32x362xbf16, #tpu.memory_space<vmem>>, vector<32x324xbf16>
    %c256_73 = arith.constant 256 : index
    %c0_74 = arith.constant 0 : index
    %54 = vector.load %arg9[%c256_73, %c0_74] : memref<288x324xbf16, #tpu.memory_space<vmem>>, vector<32x324xbf16>
    tpu.vector_store %arg9[%c256_73, %c0_74], %53 {strides = array<i32>} : memref<288x324xbf16, #tpu.memory_space<vmem>>, vector<32x324xbf16>,
    %c0_75 = arith.constant 0 : index
    %c0_76 = arith.constant 0 : index
    %55 = vector.load %arg4[%c0_75, %c0_76] : memref<32x288xbf16, #tpu.memory_space<vmem>>, vector<32x288xbf16>
    %c0_77 = arith.constant 0 : index
    %c0_78 = arith.constant 0 : index
    %56 = vector.load %arg9[%c0_77, %c0_78] : memref<288x324xbf16, #tpu.memory_space<vmem>>, vector<288x324xbf16>
    %cst_79 = arith.constant dense<0.000000e+00> : vector<32x324xf32>
    %57 = tpu.matmul %55, %56, %cst_79 {dimension_numbers = #tpu.dot_dimension_numbers<[1], [0], [0], [1], [0, 0, 1, 1], [], []>} : vector<32x288xbf16>, vector<288x324xbf16>, vector<32x324xf32> -> vector<32x324xf32>
    %c0_80 = arith.constant 0 : index
    %c0_81 = arith.constant 0 : index
    %58 = vector.load %arg10[%c0_80, %c0_81] : memref<32x324xf32, #tpu.memory_space<vmem>>, vector<32x324xf32>
    tpu.vector_store %arg10[%c0_80, %c0_81], %57 {strides = array<i32>} : memref<32x324xf32, #tpu.memory_space<vmem>>, vector<32x324xf32>,
    %c0_82 = arith.constant 0 : index
    %c0_83 = arith.constant 0 : index
    %59 = vector.load %arg10[%c0_82, %c0_83] : memref<32x324xf32, #tpu.memory_space<vmem>>, vector<32x324xf32>
    %c0_84 = arith.constant 0 : index
    %c0_85 = arith.constant 0 : index
    %60 = vector.load %arg5[%c0_84, %c0_85] : memref<32x1xf32, #tpu.memory_space<vmem>>, vector<32x1xf32>
    %61 = vector.broadcast %60 : vector<32x1xf32> to vector<32x324xf32>
    %62 = arith.addf %59, %61 : vector<32x324xf32>
    %c0_86 = arith.constant 0 : index
    %c0_87 = arith.constant 0 : index
    %c19_88 = arith.constant 19 : index
    %63 = vector.load %arg1[%c0_86, %c0_87, %c19_88] : memref<1x32x362xf32, #tpu.memory_space<vmem>>, vector<1x32x324xf32>
    %64 = vector.shape_cast %63 : vector<1x32x324xf32> to vector<32x324xf32>
    %65 = arith.addf %62, %64 : vector<32x324xf32>
    %cst_89 = arith.constant 0.000000e+00 : f32
    %66 = vector.broadcast %cst_89 : f32 to vector<32x324xf32>
    %67 = arith.maximumf %65, %66 : vector<32x324xf32>
    %c0_90 = arith.constant 0 : index
    %c0_91 = arith.constant 0 : index
    %c0_92 = arith.constant 0 : index
    %68 = vector.load %arg7[%c0_90, %c0_91, %c0_92] : memref<1x32x324xf32, #tpu.memory_space<vmem>>, vector<1x32x324xf32>
    %69 = vector.shape_cast %68 : vector<1x32x324xf32> to vector<32x324xf32>
    %70 = vector.shape_cast %67 : vector<32x324xf32> to vector<1x32x324xf32>
    tpu.vector_store %arg7[%c0_90, %c0_91, %c0_92], %70 {strides = array<i32>} : memref<1x32x324xf32, #tpu.memory_space<vmem>>, vector<1x32x324xf32>,
    return
  }
  func.func @transform_0(%arg0: i32) -> (i32, i32, i32) {
    %c0_i32 = arith.constant 0 : i32
    %c0_i32_0 = arith.constant 0 : i32
    %c0_i32_1 = arith.constant 0 : i32
    return %arg0, %c0_i32, %c0_i32_0 : i32, i32, i32
  }
  func.func @transform_1(%arg0: i32) -> (i32, i32) {
    %c0_i32 = arith.constant 0 : i32
    %c0_i32_0 = arith.constant 0 : i32
    %c0_i32_1 = arith.constant 0 : i32
    return %c0_i32, %c0_i32_0 : i32, i32
  }
  func.func @transform_2(%arg0: i32) -> (i32, i32) {
    %c0_i32 = arith.constant 0 : i32
    %c0_i32_0 = arith.constant 0 : i32
    %c0_i32_1 = arith.constant 0 : i32
    return %c0_i32, %c0_i32_0 : i32, i32
  }
  func.func @transform_3(%arg0: i32) -> (i32, i32) {
    %c0_i32 = arith.constant 0 : i32
    %c0_i32_0 = arith.constant 0 : i32
    %c0_i32_1 = arith.constant 0 : i32
    return %c0_i32, %c0_i32_0 : i32, i32
  }
  func.func @transform_4(%arg0: i32) -> (i32, i32) {
    %c0_i32 = arith.constant 0 : i32
    %c0_i32_0 = arith.constant 0 : i32
    %c0_i32_1 = arith.constant 0 : i32
    return %c0_i32, %c0_i32_0 : i32, i32
  }
  func.func @transform_5(%arg0: i32) -> (i32, i32) {
    %c0_i32 = arith.constant 0 : i32
    %c0_i32_0 = arith.constant 0 : i32
    %c0_i32_1 = arith.constant 0 : i32
    return %c0_i32, %c0_i32_0 : i32, i32
  }
  func.func @transform_6(%arg0: i32) -> (i32, i32, i32) {
    %c0_i32 = arith.constant 0 : i32
    %c0_i32_0 = arith.constant 0 : i32
    %c0_i32_1 = arith.constant 0 : i32
    return %arg0, %c0_i32, %c0_i32_0 : i32, i32, i32
  }
}

</mosaic_0001>

<bundles_post_ra>
// kernel: tpu_custom_call.1
= control target key start
LH: loop header
LB: loop body
LE: loop exit
PB: predicated region body
PF: predicated region fallthrough
CT: control target
= control target key end

     0   :  { %11 = vsyncpa [#allocation6], 0  ;;  %s3053_s0 = inlined_call_operand.hbm [shape: f32[2,32,362], index: 0, kind: input, shape index: {}]   ;;  %s3054_s1 = inlined_call_operand.vmem [shape: bf16[32,288], index: 1, kind: input, shape index: {}]   ;;  %s3055_s2 = inlined_call_operand.vmem [shape: f32[32,1], index: 2, kind: input, shape index: {}]   ;;  %s3056_s3 = inlined_call_operand.hbm [shape: bf16[32,288], index: 3, kind: input, shape index: {}]   ;;  %s3057_s4 = inlined_call_operand.vmem [shape: f32[32,1], index: 4, kind: input, shape index: {}]   ;;  %s3058_s5 = inlined_call_operand.vmem [shape: f32[1,324], index: 5, kind: input, shape index: {}]   ;;  %s3059_s6 = inlined_call_operand.hbm [shape: f32[2,32,324], index: 6, kind: output, shape index: {}]  }
   0x1   :  { %13 = vsyncpa [#allocation6 + $0x1], 0 }
   0x2   :  { %14 = vsyncpa [#allocation9], 0 }
   0x3   :  { %15 = vsyncpa [#allocation7], 0 }
   0x4   :  { %17 = vsyncpa [#allocation7 + $0x1], 0  ;;  %s2400_s21 = smov 0   ;;  %s2402_s22 = smov 0  }
   0x5   :  { %s2404_s23 = smov 0   ;;  %s2406_s24 = smov 0  }
   0x6 LB: > { %s2421_s25 = sadd.s32 4294967295, %s2344_s24   ;;  %s1995_s26 = sadd.s32 4294967294, %s2344_s24   ;;  %s2344_s24 = sphi %s2406_s24, %s3090_s24   ;;  %s2340_s23 = sphi %s2404_s23, %s3089_s23   ;;  %s2336_s22 = sphi %s2402_s22, %s3088_s22   ;;  %s2332_s21 = sphi %s2400_s21, %s3087_s21  }
   0x7   : > { %p43_p0 = scmp.ne.s32.totalorder %s2336_s22, %s2332_s21  ;;  %p3060_p1 = scmp.eq.s32.totalorder %s2421_s25, 0 }
   0x8   : > { %p178_p3 = scmp.eq.s32.totalorder %s1995_s26, 1  ;;  %p1996_p5 = scmp.ge.s32.totalorder %s2344_s24, 1 }
   0x9   : > { %p2430_p4 = por %p3060_p1, %p43_p0  ;;  %p185_p7 = scmp.lt.s32.totalorder %s2344_s24, 3 }
   0xa   : > { %p2435_p6 = por %p178_p3, %p43_p0  ;;  %s2346_s30 = smov [#allocation8]  }
   0xb   : > { %s3070_s27 = scalar_select %p2430_p4, 1, 0 }
   0xc   : > { %s3071_s28 = scalar_select %p2435_p6, 1, 0 }
   0xd   : > { %p2440_p8 = pnand %p1996_p5, %p185_p7  ;;  %s203_s7 = sshll.u32 %s2346_s30, 4  ;;  %s2444_s7 = int_to_ptr.vmem [resolvable:$true] %s203_s7 }
   0xe   : > { %s2456_s9 = sadd.s32 1, %s2344_s24   ;;  %s30_s10 = sadd.s32 1, %s2340_s23 }
   0xf   : > { %s3072_s29 = scalar_select %p2440_p8, 1, 0 }
  0x10   : > { %p2133_p9 = pneg %p2440_p8  ;;  %s27_s11 = ssub.s32 %s2344_s24, %s2456_s9 }
  0x11   : > { %s2216_s14 = scalar_lea.hbm %s3056_s3, 768 }
  0x12   : > { %p2451_p11 = pnand %p2133_p9, %p3060_p1  ;;  %p2217_p12 = scmp.ne.s32.totalorder %s3056_s3, %s2216_s14 }
  0x13   : > { %p2223_p5 = scmp.lt.u32.totalorder %s2216_s14, %s3056_s3 }
  0x14   : > { %p2218_p13 = pneg %p2451_p11 }
  0x16   : > { %p2219_p0 = pnand %p2218_p13, %p2217_p12 }
  0x18   : > { %p2220_p3 = pneg %p2219_p0 }
  0x1a   : > { %p2225_p7 = pnand %p2223_p5, %p2220_p3 }
  0x1c   : > { %2228 = shalt.err (!%p2225_p7)
}
  0x1d   : > { %s2229_s19 = scalar_lea.vmem %s2444_s7, 768  ;;  %p2237_p2 = scmp.lt.s32.totalorder %s2444_s7, %s2444_s7 }
  0x1e   : > { %p2230_p9 = scmp.ne.s32.totalorder %s2444_s7, %s2229_s19  ;;  %p2238_p6 = scmp.lt.s32.totalorder %s2229_s19, %s2229_s19 }
  0x20   : > { %p2232_p10 = pnand %p2230_p9, %p2218_p13  ;;  %p2239_p4 = por %p2238_p6, %p2237_p2 }
  0x22   : > { %p2233_p1 = pneg %p2232_p10 }
  0x24   : > { %p2240_p8 = pnand %p2239_p4, %p2233_p1 }
  0x26   : > { %2243 = shalt.err (!%p2240_p8)
}
  0x27   : > { %s2347_s20 = smov 192   ;;  %s2348_s26 = smov 12  }
  0x28   : > { %2136 = dma.hbm_to_vmem [thread:$0]  (!%p2451_p11), %s3056_s3, 768, %s2444_s7, [#allocation9], %s2347_s20, %s2347_s20, %s2348_s26  }
  0x29   : > { %p28_p2 = scmp.eq.s32.totalorder %s27_s11, 0  ;;  %p37_p1 = scmp.ne.s32.totalorder %s2340_s23, %s2336_s22 }
  0x2a   : > { %p38_p4 = scmp.eq.s32.totalorder %s2344_s24, 0  ;;  %p2146_p6 = scmp.lt.s32.totalorder %s2344_s24, 2 }
  0x2b   : > { %s2487_s13 = scalar_select %p28_p2, %s2340_s23, %s30_s10  }
  0x2c   : > { %p39_p8 = por %p38_p4, %p37_p1  ;;  %p3074_p10 = scmp.eq.s32.totalorder %s2421_s25, 1 }
  0x2d   : > { %s223_s15 = sand.u32 1, %s2340_s23   ;;  %s2122_s16 = smul.u32 1536, %s2344_s24 }
  0x2e   : > { %p2491_p12 = por %p3074_p10, %p37_p1  ;;  %s2121_s17 = smul.u32 96, %s223_s15 }
  0x2f   : > { %s2500_s19 = scalar_lea.hbm %s3053_s0, %s2122_s16  ;;  %p2502_p11 = pnand %p2146_p6, %p39_p8 }
  0x30   : > { %s227_s10 = scalar_lea.vmem [#allocation5], %s2121_s17  ;;  %s2508_s20 = scalar_lea.sflag [#allocation6], %s223_s15 }
  0x31   : > { %s234_s11 = sshll.u32 %s227_s10, 4  ;;  %s2244_s26 = scalar_lea.hbm %s2500_s19, 1536  ;;  %s2506_s11 = int_to_ptr.vmem [resolvable:$true] %s234_s11 }
  0x32   : > { %p2245_p13 = scmp.ne.s32.totalorder %s2500_s19, %s2244_s26  ;;  %p2246_p0 = pneg %p2502_p11 }
  0x33   : > { %s2249_s16 = scalar_lea.hbm %s3053_s0, 3072  ;;  %p2250_p7 = scmp.lt.u32.totalorder %s2500_s19, %s3053_s0 }
  0x34   : > { %p2247_p3 = pnand %p2246_p0, %p2245_p13  ;;  %p2251_p9 = scmp.lt.u32.totalorder %s2249_s16, %s2244_s26 }
  0x35   : > { %p2253_p1 = scmp.lt.u32.totalorder %s2244_s26, %s2500_s19 }
  0x36   : > { %p2248_p5 = pneg %p2247_p3  ;;  %p2252_p2 = por %p2251_p9, %p2250_p7 }
  0x38   : > { %p2254_p4 = por %p2253_p1, %p2252_p2 }
  0x3a   : > { %p2255_p6 = pnand %p2254_p4, %p2248_p5 }
  0x3c   : > { %2258 = shalt.err (!%p2255_p6)
}
  0x3d   : > { %s2259_s15 = scalar_lea.vmem %s2506_s11, 1536  ;;  %s2349_s17 = smov [#allocation5]  }
  0x3e   : > { %p2260_p8 = scmp.ne.s32.totalorder %s2506_s11, %s2259_s15  ;;  %s2264_s10 = sshll.u32 %s2349_s17, 4  ;;  %s2265_s10 = int_to_ptr.vmem [resolvable:$false] %s2264_s10 }
  0x3f   : > { %s2266_s30 = scalar_lea.vmem %s2265_s10, 3072  ;;  %p2267_p3 = scmp.lt.s32.totalorder %s2506_s11, %s2265_s10 }
  0x40   : > { %p2262_p10 = pnand %p2260_p8, %p2246_p0  ;;  %p2268_p7 = scmp.lt.s32.totalorder %s2266_s30, %s2259_s15 }
  0x42   : > { %p2263_p13 = pneg %p2262_p10  ;;  %p2269_p9 = por %p2268_p7, %p2267_p3 }
  0x44   : > { %p2270_p2 = pnand %p2269_p9, %p2263_p13 }
  0x46   : > { %2273 = shalt.err (!%p2270_p2)
}
  0x47   : > { %s2350_s26 = smov 384   ;;  %s2351_s12 = smov 24  }
  0x48   : > { %2140 = dma.hbm_to_vmem [thread:$0]  (!%p2502_p11), %s2500_s19, 1536, %s2506_s11, %s2508_s20, %s2350_s26, %s2350_s26, %s2351_s12  }
  0x49   : > { %p3077_p0 = scmp.ne.s32.totalorder %s3072_s29, 0 }
  0x4a   : > { %s2539_s16 = sand.u32 (!%p3077_p0), 1, %s2336_s22   ;;  %p3078_p5 = scmp.ne.s32.totalorder (!%p3077_p0), %s3070_s27, 0 }
  0x4b   : > { %246 = sbr.rel (%p3077_p0) target bundleno = 1147 (0x47b), region = 44  ;;  %s249_s18 = scalar_lea.sflag (!%p3077_p0), [#allocation6], %s2539_s16 }
  0x4c   : > { %s3063_s8 = smul.u32 (!%p3077_p0), 96, %s2539_s16 }
  0x4e   : > { %s2545_s15 = scalar_lea.vmem (!%p3077_p0), [#allocation5], %s3063_s8 }
  0x52   : > { %2319 = dma.done.wait (%p3078_p5), %s249_s18, 1536  }
  0x53   : > { %2321 = vsyncadd (%p3078_p5), %s249_s18, 4294965760  ;;  %p3079_p11 = scmp.eq.s32.totalorder %s2421_s25, 0 }
  0x55   : > { %2323 = dma.done.wait (%p3079_p11), [#allocation9], 768   ;;  %p3080_p1 = pmov %p3079_p11 }
  0x56   : > { %v287_v0 = vld [vmem:[%s2545_s15 + $0x8] sm:$0xff]  ;;  %v290_v1 = vld [vmem:[%s2545_s15 + $0x20] sm:$0xff]  ;;  %v289_v4 = vld [vmem:[%s2545_s15 + $0x18] sm:$0xff]  ;;  %vm306_vm0 = vcmask 867328   ;;  %s2352_s27 = smov 127   ;;  %vm319_vm1 = vcmask 556032  }
  0x57   : > { %2325 = vsyncadd (%p3080_p1), [#allocation9], 4294966528  ;;  %v286_v2 = vld [vmem:[%s2545_s15] sm:$0xff]  ;;  %v2558_v3 = vpack.c.bf16 %v290_v1, %v287_v0  ;;  %v288_v5 = vld [vmem:[%s2545_s15 + $0x10] sm:$0xff]  ;;  %s2353_s29 = smov 126   ;;  %s2354_s19 = smov 110  }
  0x58   : > { %v291_v6 = vld [vmem:[%s2545_s15 + $0x28] sm:$0xff]  ;;  %v2563_v7 = vpack.c.bf16 %v289_v4, %v286_v2  ;;  %v293_v9 = vld [vmem:[%s2545_s15 + $0x38] sm:$0xff]  ;;  %v296_v10 = vld [vmem:[%s2545_s15 + $0x50] sm:$0xff]  ;;  %s2355_s7 = smov 109   ;;  %s3068_s11 = smov 108   ;;  %v2360_v21 = vmov 0  }
  0x59   : > { %v300_v8 = vpack.c.bf16 %v291_v6, %v288_v5  ;;  %v294_v11 = vld [vmem:[%s2545_s15 + $0x40] sm:$0xff]  ;;  %338 = vrot.lane.b32.xlu0 %v2558_v3, %s2352_s27  ;;  %v2570_v12 = vpack.c.bf16 %v296_v10, %v293_v9  ;;  %v297_v13 = vld [vmem:[%s2545_s15 + $0x58] sm:$0xff]  ;;  %v292_v14 = vld [vmem:[%s2545_s15 + $0x30] sm:$0xff]  ;;  %751 = vmatprep.subr.bf16.mxu0 %v2558_v3  ;;  %s3066_s20 = smov 92   ;;  %s3064_s17 = smov 91   ;;  %vm348_vm2 = vcmask 1039360  }
  0x5a   : > { %v295_v15 = vld [vmem:[%s2545_s15 + $0x48] sm:$0xff]  ;;  %304 = vst [vmem:[#allocation2] sm:$0xff] %v2563_v7  ;;  %336 = vrot.lane.b32.xlu1 %v2563_v7, %s2352_s27  ;;  %v303_v16 = vpack.c.bf16 %v297_v13, %v294_v11  ;;  %752 = vmatpush1.bf16.msra.mxu0 %v2563_v7  ;;  %v2202_v20 = vld [vmem:[%s3054_s1 + $0x4] ss:$12 sps:$4 sm:$0xff]   ;;  %s2359_s26 = smov 90   ;;  %v982_v25 = vld [vmem:[%s3055_s2 + $0x18] sm:$0xff] }
  0x5b   : > { %307 = vst.msk [vmem:[#allocation2 + $0x10] sm:$0xff] %vm306_vm0, %v300_v8  ;;  %v2580_v17 = vpack.c.bf16 %v295_v15, %v292_v14  ;;  %753 = vmatprep.subr.bf16.mxu0 %v2570_v12  ;;  %889 = vmatprep.mubr.bf16.mxu1 %v2202_v20  ;;  %v980_v22 = vld [vmem:[%s3055_s2 + $0x8] sm:$0xff]  ;;  %v979_v23 = vld [vmem:[%s3055_s2] sm:$0xff]  ;;  %v981_v24 = vld [vmem:[%s3055_s2 + $0x10] sm:$0xff]  ;;  %vm389_vm3 = vcmask 1031168   ;;  %vm430_vm4 = vcmask 900096  }
  0x5c   : > { %310 = vst.msk [vmem:[#allocation2 + $0x28] sm:$0xff] %vm306_vm0, %v303_v16  ;;  %783 = vmatprep.mubr.bf16.mxu0 %v2202_v20  ;;  %2199 = vset.pattern.permute.xlu1 %v2360_v21  ;;  %vm471_vm5 = vcmask 891904   ;;  %vm512_vm6 = vcmask 883712   ;;  %vm553_vm7 = vcmask 752640   ;;  %vm594_vm8 = vcmask 744448   ;;  %s2361_s12 = smov 19  }
  0x5d   : > { %308 = vst [vmem:[#allocation2 + $0x18] sm:$0xff] %v2580_v17  ;;  %2198 = vset.pattern.permute.xlu0 %v2360_v21  ;;  %vm635_vm9 = vcmask 736256   ;;  %vm744_vm10 = vcmask 261120   ;;  %vm1091_vm11 = vcmask 1047704   ;;  %vm1080_vm12 = vcmask 154624   ;;  %s3081_s18 = smov 108  }
  0x5e   : > { %344 = vrot.lane.b32.xlu1 %v2570_v12, %s2352_s27  ;;  %754 = vmatpush1.bf16.msra.mxu0 %v2580_v17  ;;  %vm1094_vm13 = vcmask 711680   ;;  %s2362_s30 = smov [#allocation10]  }
  0x5f   : > { %s2278_s8 = sshll.u32 %s2362_s30, 4  ;;  %s2279_s8 = int_to_ptr.vmem [resolvable:$false] %s2278_s8 }
  0x62   : > { %v326_v18 = vld [vmem:[#allocation2 + $0x10] sm:$0xff]  ;;  %342 = vrot.lane.b32.xlu1 %v2580_v17, %s2352_s27 }
  0x63   : > { %340 = vrot.lane.b32.xlu0 %v326_v18, %s2352_s27  ;;  %320 = vst.msk [vmem:[#allocation3 + $0x10] sm:$0xff] %vm319_vm1, %v326_v18  ;;  %v329_v19 = vld [vmem:[#allocation2 + $0x28] sm:$0xff] }
  0x64   : > { %323 = vst.msk [vmem:[#allocation3 + $0x28] sm:$0xff] %vm319_vm1, %v329_v19 }
  0x66   : > { %381 = vrot.lane.b32.xlu1 %v326_v18, %s2353_s29 }
  0x67   : > { %346 = vrot.lane.b32.xlu0 %v329_v19, %s2352_s27 }
  0x6a   : > { %385 = vrot.lane.b32.xlu1 %v2570_v12, %s2353_s29  ;;  %v662_v60 = vld [vmem:[#allocation3 + $0x10] sm:$0xff] }
  0x6b   : > { %379 = vrot.lane.b32.xlu0 %v2558_v3, %s2353_s29  ;;  %v665_v8 = vld [vmem:[#allocation3 + $0x28] sm:$0xff] }
  0x6e   : > { %383 = vrot.lane.b32.xlu1 %v2580_v17, %s2353_s29 }
  0x6f   : > { %377 = vrot.lane.b32.xlu0 %v2563_v7, %s2353_s29 }
  0x72   : > { %422 = vrot.lane.b32.xlu1 %v326_v18, %s2354_s19 }
  0x73   : > { %387 = vrot.lane.b32.xlu0 %v329_v19, %s2353_s29 }
  0x76   : > { %426 = vrot.lane.b32.xlu1 %v2570_v12, %s2354_s19 }
  0x77   : > { %420 = vrot.lane.b32.xlu0 %v2558_v3, %s2354_s19 }
  0x7a   : > { %424 = vrot.lane.b32.xlu1 %v2580_v17, %s2354_s19 }
  0x7b   : > { %418 = vrot.lane.b32.xlu0 %v2563_v7, %s2354_s19 }
  0x7e   : > { %463 = vrot.lane.b32.xlu1 %v326_v18, %s2355_s7 }
  0x7f   : > { %428 = vrot.lane.b32.xlu0 %v329_v19, %s2354_s19 }
  0x82   : > { %467 = vrot.lane.b32.xlu1 %v2570_v12, %s2355_s7 }
  0x83   : > { %461 = vrot.lane.b32.xlu0 %v2558_v3, %s2355_s7 }
  0x86   : > { %465 = vrot.lane.b32.xlu1 %v2580_v17, %s2355_s7 }
  0x87   : > { %459 = vrot.lane.b32.xlu0 %v2563_v7, %s2355_s7 }
  0x8a   : > { %504 = vrot.lane.b32.xlu1 %v326_v18, %s3068_s11 }
  0x8b   : > { %469 = vrot.lane.b32.xlu0 %v329_v19, %s2355_s7 }
  0x8e   : > { %508 = vrot.lane.b32.xlu1 %v2570_v12, %s3068_s11 }
  0x8f   : > { %502 = vrot.lane.b32.xlu0 %v2558_v3, %s3068_s11 }
  0x92   : > { %506 = vrot.lane.b32.xlu1 %v2580_v17, %s3068_s11 }
  0x93   : > { %500 = vrot.lane.b32.xlu0 %v2563_v7, %s3068_s11 }
  0x96   : > { %545 = vrot.lane.b32.xlu1 %v326_v18, %s3066_s20 }
  0x97   : > { %510 = vrot.lane.b32.xlu0 %v329_v19, %s3068_s11  ;;  %s2280_s11 = scalar_lea.vmem %s2279_s8, 3072 }
  0x9a   : > { %549 = vrot.lane.b32.xlu1 %v2570_v12, %s3066_s20 }
  0x9b   : > { %543 = vrot.lane.b32.xlu0 %v2558_v3, %s3066_s20 }
  0x9e   : > { %547 = vrot.lane.b32.xlu1 %v2580_v17, %s3066_s20 }
  0x9f   : > { %541 = vrot.lane.b32.xlu0 %v2563_v7, %s3066_s20 }
  0xa2   : > { %586 = vrot.lane.b32.xlu1 %v326_v18, %s3064_s17 }
  0xa3   : > { %551 = vrot.lane.b32.xlu0 %v329_v19, %s3066_s20 }
  0xa6   : > { %590 = vrot.lane.b32.xlu1 %v2570_v12, %s3064_s17 }
  0xa7   : > { %584 = vrot.lane.b32.xlu0 %v2558_v3, %s3064_s17 }
  0xaa   : > { %588 = vrot.lane.b32.xlu1 %v2580_v17, %s3064_s17 }
  0xab   : > { %582 = vrot.lane.b32.xlu0 %v2563_v7, %s3064_s17 }
  0xae   : > { %627 = vrot.lane.b32.xlu1 %v326_v18, %s2359_s26 }
  0xaf   : > { %592 = vrot.lane.b32.xlu0 %v329_v19, %s3064_s17 }
  0xb2   : > { %631 = vrot.lane.b32.xlu1 %v2570_v12, %s2359_s26 }
  0xb3   : > { %625 = vrot.lane.b32.xlu0 %v2558_v3, %s2359_s26 }
  0xb6   : > { %629 = vrot.lane.b32.xlu1 %v2580_v17, %s2359_s26 }
  0xb7   : > { %623 = vrot.lane.b32.xlu0 %v2563_v7, %s2359_s26 }
  0xba   : > { %990 = vperm.xlu1 %2199, %v980_v22  }
  0xbb   : > { %633 = vrot.lane.b32.xlu0 %v329_v19, %s2359_s26 }
  0xbe   : > { %995 = vperm.xlu1 %2199, %v981_v24  }
  0xbf   : > { %985 = vperm.xlu0 %2198, %v979_v23  }
  0xc3   : > { %1000 = vperm.xlu0 %2198, %v982_v25  }
  0xcb   : > { %v339_v27 = vpop.permute.xlu0 %338 }
  0xcc   : > { %v337_v26 = vpop.permute.xlu1 %336 }
  0xcd   : > { %v349_v32 = vsel %vm348_vm2, %v337_v26, %v339_v27 }
  0xd0   : > { %v345_v28 = vpop.permute.xlu1 %344 }
  0xd4   : > { %v343_v30 = vpop.permute.xlu1 %342 }
  0xd5   : > { %v341_v29 = vpop.permute.xlu0 %340  ;;  %v351_v34 = vsel %vm348_vm2, %v343_v30, %v345_v28 }
  0xd6   : > { %v350_v31 = vsel %vm348_vm2, %v339_v27, %v341_v29  ;;  %361 = vst.msk [vmem:[#allocation3 + $0x40] sm:$0xff] %vm319_vm1, %v341_v29 }
  0xd7   : > { %755 = vmatprep.subr.bf16.mxu0 %v350_v31 }
  0xd8   : > { %756 = vmatpush1.bf16.msra.mxu0 %v349_v32  ;;  %v382_v35 = vpop.permute.xlu1 %381 }
  0xd9   : > { %v347_v33 = vpop.permute.xlu0 %346  ;;  %402 = vst.msk [vmem:[#allocation3 + $0x70] sm:$0xff] %vm319_vm1, %v382_v35 }
  0xda   : > { %v352_v36 = vsel %vm348_vm2, %v345_v28, %v347_v33  ;;  %364 = vst.msk [vmem:[#allocation3 + $0x58] sm:$0xff] %vm319_vm1, %v347_v33 }
  0xdb   : > { %757 = vmatprep.subr.bf16.mxu0 %v352_v36 }
  0xdc   : > { %758 = vmatpush1.bf16.msra.mxu0 %v351_v34  ;;  %v386_v38 = vpop.permute.xlu1 %385 }
  0xdd   : > { %v380_v37 = vpop.permute.xlu0 %379  ;;  %v668_v18 = vld [vmem:[#allocation3 + $0x40] sm:$0xff] }
  0xde   : > { %v391_v39 = vsel %vm389_vm3, %v380_v37, %v382_v35 }
  0xdf   : > { %759 = vmatprep.subr.bf16.mxu0 %v391_v39 }
  0xe0   : > { %v384_v41 = vpop.permute.xlu1 %383  ;;  %v674_v33 = vld [vmem:[#allocation3 + $0x70] sm:$0xff] }
  0xe1   : > { %v378_v40 = vpop.permute.xlu0 %377  ;;  %v392_v44 = vsel %vm389_vm3, %v384_v41, %v386_v38  ;;  %v671_v28 = vld [vmem:[#allocation3 + $0x58] sm:$0xff] }
  0xe2   : > { %v390_v42 = vsel %vm389_vm3, %v378_v40, %v380_v37 }
  0xe3   : > { %760 = vmatpush1.bf16.msra.mxu0 %v390_v42 }
  0xe4   : > { %v423_v45 = vpop.permute.xlu1 %422 }
  0xe5   : > { %v388_v43 = vpop.permute.xlu0 %387  ;;  %443 = vst.msk [vmem:[#allocation3 + $0xa0] sm:$0xff] %vm319_vm1, %v423_v45 }
  0xe6   : > { %v393_v46 = vsel %vm389_vm3, %v386_v38, %v388_v43  ;;  %405 = vst.msk [vmem:[#allocation3 + $0x88] sm:$0xff] %vm319_vm1, %v388_v43 }
  0xe7   : > { %761 = vmatprep.subr.bf16.mxu0 %v393_v46 }
  0xe8   : > { %762 = vmatpush1.bf16.msra.mxu0 %v392_v44  ;;  %v427_v48 = vpop.permute.xlu1 %426 }
  0xe9   : > { %v421_v47 = vpop.permute.xlu0 %420 }
  0xea   : > { %v432_v49 = vsel %vm430_vm4, %v421_v47, %v423_v45 }
  0xeb   : > { %763 = vmatprep.subr.bf16.mxu0 %v432_v49  ;;  %v2203_v49 = vld [vmem:[%s3054_s1 + $0x1c] ss:$12 sps:$4 sm:$0xff]  }
  0xec   : > { %v425_v51 = vpop.permute.xlu1 %424 }
  0xed   : > { %v419_v50 = vpop.permute.xlu0 %418  ;;  %v433_v54 = vsel %vm430_vm4, %v425_v51, %v427_v48  ;;  %v677_v42 = vld [vmem:[#allocation3 + $0x88] sm:$0xff] }
  0xee   : > { %v431_v52 = vsel %vm430_vm4, %v419_v50, %v421_v47  ;;  %v680_v47 = vld [vmem:[#allocation3 + $0xa0] sm:$0xff] }
  0xef   : > { %764 = vmatpush1.bf16.msra.mxu0 %v431_v52 }
  0xf0   : > { %v464_v55 = vpop.permute.xlu1 %463 }
  0xf1   : > { %v429_v53 = vpop.permute.xlu0 %428  ;;  %484 = vst.msk [vmem:[#allocation3 + $0xd0] sm:$0xff] %vm319_vm1, %v464_v55 }
  0xf2   : > { %v434_v56 = vsel %vm430_vm4, %v427_v48, %v429_v53  ;;  %446 = vst.msk [vmem:[#allocation3 + $0xb8] sm:$0xff] %vm319_vm1, %v429_v53  ;;  %v2200_v48 = vld [vmem:[%s3054_s1] ss:$12 sps:$4 sm:$0xff]  }
  0xf3   : > { %765 = vmatprep.subr.bf16.mxu0 %v434_v56 }
  0xf4   : > { %766 = vmatpush1.bf16.msra.mxu0 %v433_v54  ;;  %v468_v58 = vpop.permute.xlu1 %467 }
  0xf5   : > { %v462_v57 = vpop.permute.xlu0 %461 }
  0xf6   : > { %v473_v59 = vsel %vm471_vm5, %v462_v57, %v464_v55 }
  0xf7   : > { %767 = vmatprep.subr.bf16.mxu0 %v473_v59  ;;  %v2205_v59 = vld [vmem:[%s3054_s1 + $0x18] ss:$12 sps:$4 sm:$0xff]  }
  0xf8   : > { %v466_v62 = vpop.permute.xlu1 %465  ;;  %v686_v63 = vld [vmem:[#allocation3 + $0xd0] sm:$0xff] }
  0xf9   : > { %v460_v61 = vpop.permute.xlu0 %459  ;;  %2025 = vmatprep.subr.bf16.mxu1 %v686_v63  ;;  %v474_v2 = vsel %vm471_vm5, %v466_v62, %v468_v58  ;;  %v2206_v63 = vld [vmem:[%s3054_s1 + $0x8] ss:$12 sps:$4 sm:$0xff]  }
  0xfa   : > { %v472_v0 = vsel %vm471_vm5, %v460_v61, %v462_v57  ;;  %2026 = vmatpush3.bf16.msra.mxu1 %v662_v60  ;;  %v683_v57 = vld [vmem:[#allocation3 + $0xb8] sm:$0xff] }
  0xfb   : > { %768 = vmatpush1.bf16.msra.mxu0 %v472_v0 }
  0xfc   : > { %v505_v3 = vpop.permute.xlu1 %504 }
  0xfd   : > { %v470_v1 = vpop.permute.xlu0 %469  ;;  %525 = vst.msk [vmem:[#allocation3 + $0x100] sm:$0xff] %vm319_vm1, %v505_v3 }
  0xfe   : > { %v475_v4 = vsel %vm471_vm5, %v468_v58, %v470_v1  ;;  %487 = vst.msk [vmem:[#allocation3 + $0xe8] sm:$0xff] %vm319_vm1, %v470_v1  ;;  %v2207_v1 = vld [vmem:[%s3054_s1 + $0x20] ss:$12 sps:$4 sm:$0xff]  }
  0xff   : > { %769 = vmatprep.subr.bf16.mxu0 %v475_v4 }
 0x100   : > { %770 = vmatpush1.bf16.msra.mxu0 %v474_v2  ;;  %v509_v6 = vpop.permute.xlu1 %508  ;;  %v1029_v2 = vlaneseq }
 0x101   : > { %v503_v5 = vpop.permute.xlu0 %502 }
 0x102   : > { %v514_v7 = vsel %vm512_vm6, %v503_v5, %v505_v3 }
 0x103   : > { %771 = vmatprep.subr.bf16.mxu0 %v514_v7 }
 0x104   : > { %v507_v11 = vpop.permute.xlu1 %506  ;;  %v692_v12 = vld [vmem:[#allocation3 + $0x100] sm:$0xff] }
 0x105   : > { %v501_v9 = vpop.permute.xlu0 %500  ;;  %v689_v10 = vld [vmem:[#allocation3 + $0xe8] sm:$0xff]  ;;  %v515_v15 = vsel %vm512_vm6, %v507_v11, %v509_v6 }
 0x106   : > { %v513_v13 = vsel %vm512_vm6, %v501_v9, %v503_v5  ;;  %2027 = vmatprep.subr.bf16.mxu1 %v689_v10 }
 0x107   : > { %2028 = vmatpush3.bf16.msra.mxu1 %v665_v8  ;;  %772 = vmatpush1.bf16.msra.mxu0 %v513_v13  ;;  %v2751_v8 = vshrl.u32 %v1029_v2, 7  ;;  %v2759_v13 = vld [vmem:[%s3058_s5] sm:$0x7] }
 0x108   : > { %2029 = vmatprep.subr.bf16.mxu1 %v692_v12  ;;  %v546_v16 = vpop.permute.xlu1 %545 }
 0x109   : > { %v511_v14 = vpop.permute.xlu0 %510  ;;  %566 = vst.msk [vmem:[#allocation3 + $0x130] sm:$0xff] %vm319_vm1, %v546_v16  ;;  %v1031_v10 = vsub.s32 0, %v2751_v8  ;;  %v1039_v2 = vsub.s32 2, %v2751_v8 }
 0x10a   : > { %v516_v17 = vsel %vm512_vm6, %v509_v6, %v511_v14  ;;  %528 = vst.msk [vmem:[#allocation3 + $0x118] sm:$0xff] %vm319_vm1, %v511_v14  ;;  %v1035_v14 = vsub.s32 1, %v2751_v8 }
 0x10b   : > { %2030 = vmatpush3.bf16.msra.mxu1 %v668_v18  ;;  %773 = vmatprep.subr.bf16.mxu0 %v516_v17 }
 0x10c   : > { %774 = vmatpush1.bf16.msra.mxu0 %v515_v15  ;;  %v550_v20 = vpop.permute.xlu1 %549 }
 0x10d   : > { %v544_v19 = vpop.permute.xlu0 %543 }
 0x10e   : > { %v555_v22 = vsel %vm553_vm7, %v544_v19, %v546_v16 }
 0x10f   : > { %775 = vmatprep.subr.bf16.mxu0 %v555_v22 }
 0x110   : > { %v548_v25 = vpop.permute.xlu1 %547  ;;  %v698_v26 = vld [vmem:[#allocation3 + $0x130] sm:$0xff] }
 0x111   : > { %v542_v23 = vpop.permute.xlu0 %541  ;;  %v695_v24 = vld [vmem:[#allocation3 + $0x118] sm:$0xff]  ;;  %v556_v30 = vsel %vm553_vm7, %v548_v25, %v550_v20 }
 0x112   : > { %v554_v27 = vsel %vm553_vm7, %v542_v23, %v544_v19  ;;  %2031 = vmatprep.subr.bf16.mxu1 %v695_v24  ;;  %v1032_v24 = vrot.slane %v2759_v13, %v1031_v10 }
 0x113   : > { %2032 = vmatpush3.bf16.msra.mxu1 %v671_v28  ;;  %776 = vmatpush1.bf16.msra.mxu0 %v554_v27  ;;  %v1036_v28 = vrot.slane %v2759_v13, %v1035_v14 }
 0x114   : > { %2033 = vmatprep.subr.bf16.mxu1 %v698_v26  ;;  %v587_v31 = vpop.permute.xlu1 %586 }
 0x115   : > { %v552_v29 = vpop.permute.xlu0 %551  ;;  %607 = vst.msk [vmem:[#allocation3 + $0x160] sm:$0xff] %vm319_vm1, %v587_v31 }
 0x116   : > { %v557_v32 = vsel %vm553_vm7, %v550_v20, %v552_v29  ;;  %569 = vst.msk [vmem:[#allocation3 + $0x148] sm:$0xff] %vm319_vm1, %v552_v29 }
 0x117   : > { %2034 = vmatpush3.bf16.msra.mxu1 %v674_v33  ;;  %777 = vmatprep.subr.bf16.mxu0 %v557_v32 }
 0x118   : > { %778 = vmatpush1.bf16.msra.mxu0 %v556_v30  ;;  %v591_v35 = vpop.permute.xlu1 %590 }
 0x119   : > { %v585_v34 = vpop.permute.xlu0 %584 }
 0x11a   : > { %v596_v36 = vsel %vm594_vm8, %v585_v34, %v587_v31 }
 0x11b   : > { %779 = vmatprep.subr.bf16.mxu0 %v596_v36 }
 0x11c   : > { %v589_v39 = vpop.permute.xlu1 %588  ;;  %v704_v40 = vld [vmem:[#allocation3 + $0x160] sm:$0xff] }
 0x11d   : > { %v583_v37 = vpop.permute.xlu0 %582  ;;  %v701_v38 = vld [vmem:[#allocation3 + $0x148] sm:$0xff]  ;;  %v597_v44 = vsel %vm594_vm8, %v589_v39, %v591_v35 }
 0x11e   : > { %v595_v41 = vsel %vm594_vm8, %v583_v37, %v585_v34  ;;  %2035 = vmatprep.subr.bf16.mxu1 %v701_v38 }
 0x11f   : > { %2036 = vmatpush3.bf16.msra.mxu1 %v677_v42  ;;  %780 = vmatpush1.bf16.msra.mxu0 %v595_v41 }
 0x120   : > { %2037 = vmatprep.subr.bf16.mxu1 %v704_v40  ;;  %v628_v45 = vpop.permute.xlu1 %627 }
 0x121   : > { %v593_v43 = vpop.permute.xlu0 %592  ;;  %648 = vst.msk [vmem:[#allocation3 + $0x190] sm:$0xff] %vm319_vm1, %v628_v45 }
 0x122   : > { %v598_v46 = vsel %vm594_vm8, %v591_v35, %v593_v43  ;;  %610 = vst.msk [vmem:[#allocation3 + $0x178] sm:$0xff] %vm319_vm1, %v593_v43 }
 0x123   : > { %2038 = vmatpush3.bf16.msra.mxu1 %v680_v47  ;;  %781 = vmatprep.subr.bf16.mxu0 %v598_v46 }
 0x124   : > { %782 = vmatpush1.bf16.msra.mxu0 %v597_v44  ;;  %v632_v51 = vpop.permute.xlu1 %631 }
 0x125   : > { %v626_v50 = vpop.permute.xlu0 %625 }
 0x126   : > { %v637_v52 = vsel %vm635_vm9, %v626_v50, %v628_v45 }
 0x127   : > { %784 = vmatmul.mubr.bf16.vlgmr.msra.gmra.mrb[0].mxu0 %v2200_v48  ;;  %804 = vmatprep.subr.bf16.mxu0 %v637_v52 }
 0x128   : > { %793 = vmatprep.mubr.bf16.mxu0 %v2203_v49  ;;  %v710_v55 = vld [vmem:[#allocation3 + $0x190] sm:$0xff]  ;;  %v630_v58 = vpop.permute.xlu1 %629 }
 0x129   : > { %v624_v53 = vpop.permute.xlu0 %623  ;;  %v707_v54 = vld [vmem:[#allocation3 + $0x178] sm:$0xff]  ;;  %v638_v62 = vsel %vm635_vm9, %v630_v58, %v632_v51 }
 0x12a   : > { %v636_v56 = vsel %vm635_vm9, %v624_v53, %v626_v50  ;;  %2039 = vmatprep.subr.bf16.mxu1 %v707_v54 }
 0x12b   : > { %2040 = vmatpush3.bf16.msra.mxu1 %v683_v57  ;;  %805 = vmatpush1.bf16.msra.mxu0 %v636_v56 }
 0x12c   : > { %2089 = vmatprep.subr.bf16.mxu1 %v710_v55 }
 0x12d   : > { %v634_v60 = vpop.permute.xlu0 %633 }
 0x12e   : > { %890 = vmatmul.mubr.bf16.vlgmr.msra.gmra.mrb[0].mxu1 %v2200_v48  ;;  %v639_v61 = vsel %vm635_vm9, %v632_v51, %v634_v60  ;;  %651 = vst.msk [vmem:[#allocation3 + $0x1a8] sm:$0xff] %vm319_vm1, %v634_v60 }
 0x12f   : > { %2090 = vmatpush3.bf16.msra.mxu1 %v710_v55  ;;  %897 = vmatprep.mubr.bf16.mxu1 %v2203_v49 }
 0x130   : > { %794 = vmatmul.mubr.bf16.gmra.mrb[4].mxu0 %v2205_v59  ;;  %806 = vmatprep.subr.bf16.mxu0 %v639_v61 }
 0x131   : > { %807 = vmatpush1.bf16.msra.mxu0 %v638_v62  ;;  %836 = vmatprep.mubr.bf16.mxu0 %v2360_v21 }
 0x135   : > { %v713_v0 = vld [vmem:[#allocation3 + $0x1a8] sm:$0xff] }
 0x136   : > { %898 = vmatmul.mubr.bf16.gmra.mrb[4].mxu1 %v2205_v59  ;;  %2091 = vmatprep.subr.bf16.mxu1 %v713_v0 }
 0x137   : > { %2092 = vmatpush3.bf16.msra.mxu1 %v713_v0  ;;  %2093 = vmatprep.mubr.msk.bf16.mxu1 %vm744_vm10, %v2206_v63 }
 0x138   : > { %2008 = vmatmul.mubr.msk.bf16.vlgmr.msra.gmra.mrb[0].mxu0 %vm744_vm10, %v2206_v63 }
 0x139   : > { %846 = vmatprep.mubr.bf16.mxu0 %v2360_v21  ;;  %v2762_v16 = vpop.permute.xlu1 %990 }
 0x13d   : > { %v996_v38 = vpop.permute.xlu1 %995 }
 0x13e   : > { %2094 = vmatmul.mubr.msk.bf16.vlgmr.msra.gmra.mrb[8].mxu1 %vm744_vm10, %v2207_v1  ;;  %v2754_v12 = vpop.permute.xlu0 %985 }
 0x140   : > { %2009 = vmatmul.mubr.msk.bf16.gmra.mrb[4].mxu0 %vm744_vm10, %v2207_v1 }
 0x142   : > { %v1001_v42 = vpop.permute.xlu0 %1000 }
 0x201   : > { %v2041_v3 = vpop.f32.mrb[0].mxu1 }
 0x202   : > { %v2042_v4 = vpop.f32.mrb[1].mxu1 }
 0x203   : > { %v2043_v5 = vadd.f32 %v2042_v4, %v2041_v3  ;;  %v2044_v6 = vpop.f32.mrb[2].mxu1 }
 0x204   : > { %v2045_v7 = vpop.f32.mrb[3].mxu1 }
 0x205   : > { %v2046_v9 = vadd.f32 %v2045_v7, %v2044_v6 }
 0x209   : > { %v2047_v11 = vpop.f32.mrb[4].mxu1 }
 0x20a   : > { %v2048_v15 = vpop.f32.mrb[5].mxu1 }
 0x20b   : > { %v2049_v17 = vadd.f32 %v2048_v15, %v2047_v11  ;;  %v2050_v18 = vpop.f32.mrb[6].mxu1  ;;  %v838_v19 = vpop.f32.mrb[0].mxu0 }
 0x20c   : > { %v2051_v20 = vpop.f32.mrb[7].mxu1  ;;  %v840_v22 = vpop.f32.mrb[1].mxu0  ;;  %v1003_v23 = vadd.f32 %v2754_v12, %v838_v19  ;;  %v1040_v19 = vrot.slane %v2759_v13, %v1039_v2 }
 0x20d   : > { %v2052_v25 = vadd.f32 %v2051_v20, %v2050_v18  ;;  %v842_v26 = vpop.f32.mrb[2].mxu0  ;;  %v1004_v27 = vadd.f32 %v2754_v12, %v840_v22 }
 0x20e   : > { %v844_v29 = vpop.f32.mrb[3].mxu0  ;;  %v1006_v30 = vadd.f32 %v2762_v16, %v842_v26  ;;  %v1015_v31 = vmax.f32 %v1003_v23, 0.0 }
 0x20f   : > { %v1007_v32 = vadd.f32 %v2762_v16, %v844_v29  ;;  %v1016_v33 = vmax.f32 %v1004_v27, 0.0 }
 0x210   : > { %v1018_v34 = vmax.f32 %v1006_v30, 0.0  ;;  %v2770_v35 = vmul.f32 %v1032_v24, %v1015_v31 }
 0x211   : > { %v2095_v36 = vpop.f32.mrb[8].mxu1  ;;  %v1019_v37 = vmax.f32 %v1007_v32, 0.0  ;;  %v1045_v39 = vmul.f32 %v1036_v28, %v1016_v33 }
 0x212   : > { %v949_v40 = vadd.f32 %v2095_v36, %v2049_v17  ;;  %v940_v41 = vpop.f32.mrb[9].mxu1  ;;  %v1047_v43 = vmul.f32 %v1032_v24, %v1018_v34 }
 0x213   : > { %v941_v44 = vadd.f32 %v2043_v5, %v940_v41  ;;  %v2096_v45 = vpop.f32.mrb[10].mxu1  ;;  %v848_v46 = vpop.f32.mrb[4].mxu0  ;;  %v1048_v47 = vmul.f32 %v1036_v28, %v1019_v37  ;;  %v2210_v41 = vld [vmem:[#allocation8 + $0x4] ss:$12 sps:$4 sm:$0xff]  }
 0x214   : > { %963 = vst.msk [vmem:[#allocation4 + $0x40] sm:$0xff] %vm319_vm1, %v949_v40  ;;  %v952_v48 = vadd.f32 %v2096_v45, %v2052_v25  ;;  %v943_v49 = vpop.f32.mrb[11].mxu1  ;;  %v1009_v50 = vadd.f32 %v996_v38, %v848_v46  ;;  %v850_v51 = vpop.f32.mrb[5].mxu0  ;;  %v1056_v52 = vpack.c.bf16 %v1047_v43, %v2770_v35  ;;  %1667 = vmatprep.mubr.bf16.mxu0 %v2210_v41  ;;  %v1757_v43 = vld [vmem:[%s3057_s4] sm:$0xff]  ;;  %v1759_v45 = vld [vmem:[%s3057_s4 + $0x10] sm:$0xff]  ;;  %v1794_v46 = vld [vmem:[%s2545_s15 + $0x8] sm:$0xff] }
 0x215   : > { %957 = vst.msk [vmem:[#allocation4 + $0x10] sm:$0xff] %vm319_vm1, %v941_v44  ;;  %v944_v53 = vadd.f32 %v2046_v9, %v943_v49  ;;  %v852_v54 = vpop.f32.mrb[6].mxu0  ;;  %v1057_v55 = vpack.c.bf16 %v1048_v47, %v1045_v39  ;;  %v1010_v56 = vadd.f32 %v996_v38, %v850_v51  ;;  %1561 = vmatprep.mubr.bf16.mxu1 %v2210_v41  ;;  %v1760_v44 = vld [vmem:[%s3057_s4 + $0x18] sm:$0xff]  ;;  %v1793_v47 = vld [vmem:[%s2545_s15] sm:$0xff]  ;;  %v1795_v49 = vld [vmem:[%s2545_s15 + $0x10] sm:$0xff] }
 0x216   : > { %966 = vst.msk [vmem:[#allocation4 + $0x58] sm:$0xff] %vm319_vm1, %v952_v48  ;;  %v1021_v57 = vmax.f32 %v1009_v50, 0.0  ;;  %v1012_v58 = vadd.f32 %v1001_v42, %v852_v54  ;;  %v854_v59 = vpop.f32.mrb[7].mxu0  ;;  %v1796_v48 = vld [vmem:[%s2545_s15 + $0x18] sm:$0xff]  ;;  %v1798_v50 = vld [vmem:[%s2545_s15 + $0x28] sm:$0xff]  ;;  %v1797_v51 = vld [vmem:[%s2545_s15 + $0x20] sm:$0xff] }
 0x217   : > { %960 = vst.msk [vmem:[#allocation4 + $0x28] sm:$0xff] %vm319_vm1, %v944_v53  ;;  %1070 = vrot.lane.b32.xlu0 %v1057_v55, %s2361_s12  ;;  %v1013_v60 = vadd.f32 %v1001_v42, %v854_v59  ;;  %v1022_v61 = vmax.f32 %v1010_v56, 0.0  ;;  %v1799_v54 = vld [vmem:[%s2545_s15 + $0x30] sm:$0xff]  ;;  %v1802_v56 = vld [vmem:[%s2545_s15 + $0x48] sm:$0xff] }
 0x218   : > { %v1024_v62 = vmax.f32 %v1012_v58, 0.0  ;;  %v1050_v63 = vmul.f32 %v1032_v24, %v1021_v57  ;;  %v1801_v58 = vld [vmem:[%s2545_s15 + $0x40] sm:$0xff] }
 0x219   : > { %v1025_v0 = vmax.f32 %v1013_v60, 0.0  ;;  %v1051_v1 = vmul.f32 %v1036_v28, %v1022_v61  ;;  %v1804_v60 = vld [vmem:[%s2545_s15 + $0x58] sm:$0xff] }
 0x21a   : > { %v1053_v3 = vmul.f32 %v1032_v24, %v1024_v62  ;;  %v1803_v62 = vld [vmem:[%s2545_s15 + $0x50] sm:$0xff] }
 0x21b   : > { %v975_v4 = vld [vmem:[#allocation4 + $0x40] sm:$0xff]  ;;  %v1054_v5 = vmul.f32 %v1036_v28, %v1025_v0 }
 0x21c   : > { %v969_v6 = vld [vmem:[#allocation4 + $0x10] sm:$0xff]  ;;  %v1011_v7 = vadd.f32 %v996_v38, %v975_v4  ;;  %v1059_v9 = vpack.c.bf16 %v1053_v3, %v1050_v63 }
 0x21d   : > { %v1005_v10 = vadd.f32 %v2754_v12, %v969_v6  ;;  %v978_v11 = vld [vmem:[#allocation4 + $0x58] sm:$0xff]  ;;  %v1060_v14 = vpack.c.bf16 %v1054_v5, %v1051_v1 }
 0x21e   : > { %v972_v15 = vld [vmem:[#allocation4 + $0x28] sm:$0xff]  ;;  %v1023_v17 = vmax.f32 %v1011_v7, 0.0  ;;  %v1014_v18 = vadd.f32 %v1001_v42, %v978_v11  ;;  %1074 = vrot.lane.b32.xlu0 %v1059_v9, %s2361_s12 }
 0x21f   : > { %v1008_v20 = vadd.f32 %v2762_v16, %v972_v15  ;;  %v1017_v8 = vmax.f32 %v1005_v10, 0.0  ;;  %v1758_v42 = vld [vmem:[%s3057_s4 + $0x8] sm:$0xff] }
 0x220   : > { %v1026_v22 = vmax.f32 %v1014_v18, 0.0  ;;  %v1052_v24 = vmul.f32 %v1040_v19, %v1023_v17 }
 0x221   : > { %v1020_v23 = vmax.f32 %v1008_v20, 0.0  ;;  %v1046_v26 = vmul.f32 %v1040_v19, %v1017_v8 }
 0x222   : > { %v1055_v25 = vmul.f32 %v1040_v19, %v1026_v22 }
 0x223   : > { %v1049_v27 = vmul.f32 %v1040_v19, %v1020_v23 }
 0x224   : > { %v1061_v28 = vpack.c.bf16 %v1055_v25, %v1052_v24 }
 0x225   : > { %v1058_v12 = vpack.c.bf16 %v1049_v27, %v1046_v26 }
 0x226   : > { %1078 = vrot.lane.b32.xlu0 %v1061_v28, %s2361_s12 }
 0x227   : > { %1072 = vrot.lane.b32.xlu1 %v1058_v12, %s2361_s12 }
 0x22b   : > { %1068 = vrot.lane.b32.xlu1 %v1056_v52, %s2361_s12  ;;  %v1800_v52 = vld [vmem:[%s2545_s15 + $0x38] sm:$0xff]  ;;  %s3084_s15 = smul.u32 96, %s2539_s16 }
 0x22f   : > { %1076 = vrot.lane.b32.xlu1 %v1060_v14, %s2361_s12 }
 0x289   : > { %v1071_v13 = vpop.permute.xlu0 %1070 }
 0x290   : > { %v1075_v16 = vpop.permute.xlu0 %1074 }
 0x291   : > { %1096 = vst.msk [vmem:[#allocation2 + $0x18] sm:$0xff] %vm1091_vm11, %v1075_v16 }
 0x298   : > { %v2787_v29 = vld [vmem:[#allocation2 + $0x18] sm:$0xff]  ;;  %v1079_v35 = vpop.permute.xlu0 %1078 }
 0x299   : > { %v1073_v30 = vpop.permute.xlu1 %1072 }
 0x29a   : > { %v1082_v31 = vsel %vm1080_vm12, %v1071_v13, %v1073_v30 }
 0x29b   : > { %1095 = vst.msk [vmem:[#allocation2 + $0x10] sm:$0xff] %vm1094_vm13, %v1082_v31 }
 0x29d   : > { %v1069_v32 = vpop.permute.xlu1 %1068 }
 0x29e   : > { %v1081_v33 = vsel %vm1080_vm12, %v1069_v32, %v1071_v13  ;;  %1092 = vst.msk [vmem:[#allocation2] sm:$0xff] %vm1091_vm11, %v1069_v32 }
 0x29f   : > { %1529 = vmatprep.subr.bf16.mxu1 %v1081_v33 }
 0x2a1   : > { %v1077_v34 = vpop.permute.xlu1 %1076 }
 0x2a2   : > { %v1083_v36 = vsel %vm1080_vm12, %v1075_v16, %v1077_v34  ;;  %v1113_v37 = vld [vmem:[#allocation2 + $0x10] sm:$0xff]  ;;  %v1084_v38 = vsel %vm1080_vm12, %v1077_v34, %v1079_v35 }
 0x2a3   : > { %1127 = vrot.lane.b32.xlu0 %v1113_v37, %s2352_s27  ;;  %1098 = vst.msk [vmem:[#allocation2 + $0x28] sm:$0xff] %vm1094_vm13, %v1084_v38 }
 0x2a4   : > { %1107 = vst.msk [vmem:[#allocation3 + $0x10] sm:$0xff] %vm319_vm1, %v1113_v37 }
 0x2a5   : > { %v1111_v39 = vld [vmem:[#allocation2] sm:$0xff] }
 0x2a6   : > { %1123 = vrot.lane.b32.xlu1 %v1111_v39, %s2352_s27  ;;  %1530 = vmatpush1.bf16.msra.mxu1 %v1111_v39 }
 0x2a7   : > { %1167 = vrot.lane.b32.xlu0 %v1113_v37, %s2353_s29  ;;  %1531 = vmatprep.subr.bf16.mxu1 %v1083_v36 }
 0x2aa   : > { %1163 = vrot.lane.b32.xlu1 %v1111_v39, %s2353_s29  ;;  %1532 = vmatpush1.bf16.msra.mxu1 %v2787_v29  ;;  %v1116_v40 = vld [vmem:[#allocation2 + $0x28] sm:$0xff] }
 0x2ab   : > { %1207 = vrot.lane.b32.xlu0 %v1113_v37, %s2354_s19  ;;  %1110 = vst.msk [vmem:[#allocation3 + $0x28] sm:$0xff] %vm319_vm1, %v1116_v40  ;;  %v1441_v9 = vld [vmem:[#allocation3 + $0x10] sm:$0xff] }
 0x2ae   : > { %1203 = vrot.lane.b32.xlu1 %v1111_v39, %s2354_s19 }
 0x2af   : > { %1247 = vrot.lane.b32.xlu0 %v1113_v37, %s2355_s7 }
 0x2b2   : > { %1243 = vrot.lane.b32.xlu1 %v1111_v39, %s2355_s7 }
 0x2b3   : > { %1129 = vrot.lane.b32.xlu0 %v2787_v29, %s2352_s27 }
 0x2b6   : > { %1125 = vrot.lane.b32.xlu1 %v1081_v33, %s2352_s27 }
 0x2b7   : > { %1169 = vrot.lane.b32.xlu0 %v2787_v29, %s2353_s29 }
 0x2ba   : > { %1165 = vrot.lane.b32.xlu1 %v1081_v33, %s2353_s29 }
 0x2bb   : > { %1209 = vrot.lane.b32.xlu0 %v2787_v29, %s2354_s19 }
 0x2be   : > { %1205 = vrot.lane.b32.xlu1 %v1081_v33, %s2354_s19 }
 0x2bf   : > { %1131 = vrot.lane.b32.xlu0 %v1083_v36, %s2352_s27 }
 0x2c2   : > { %1245 = vrot.lane.b32.xlu1 %v1081_v33, %s2355_s7 }
 0x2c3   : > { %1249 = vrot.lane.b32.xlu0 %v2787_v29, %s2355_s7 }
 0x2c6   : > { %1133 = vrot.lane.b32.xlu1 %v1116_v40, %s2352_s27  ;;  %s3082_s27 = smov 92  }
 0x2c7   : > { %1171 = vrot.lane.b32.xlu0 %v1083_v36, %s2353_s29 }
 0x2ca   : > { %1285 = vrot.lane.b32.xlu1 %v1081_v33, %s3081_s18 }
 0x2cb   : > { %1287 = vrot.lane.b32.xlu0 %v1113_v37, %s3081_s18 }
 0x2ce   : > { %1173 = vrot.lane.b32.xlu1 %v1116_v40, %s2353_s29  ;;  %s3083_s29 = smov 91  }
 0x2cf   : > { %1211 = vrot.lane.b32.xlu0 %v1083_v36, %s2354_s19 }
 0x2d2   : > { %1283 = vrot.lane.b32.xlu1 %v1111_v39, %s3081_s18 }
 0x2d3   : > { %1289 = vrot.lane.b32.xlu0 %v2787_v29, %s3081_s18 }
 0x2d6   : > { %1213 = vrot.lane.b32.xlu1 %v1116_v40, %s2354_s19 }
 0x2d7   : > { %1251 = vrot.lane.b32.xlu0 %v1083_v36, %s2355_s7 }
 0x2da   : > { %1325 = vrot.lane.b32.xlu1 %v1081_v33, %s3082_s27 }
 0x2db   : > { %1327 = vrot.lane.b32.xlu0 %v1113_v37, %s3082_s27 }
 0x2de   : > { %1253 = vrot.lane.b32.xlu1 %v1116_v40, %s2355_s7 }
 0x2df   : > { %1291 = vrot.lane.b32.xlu0 %v1083_v36, %s3081_s18 }
 0x2e2   : > { %1323 = vrot.lane.b32.xlu1 %v1111_v39, %s3082_s27 }
 0x2e3   : > { %1329 = vrot.lane.b32.xlu0 %v2787_v29, %s3082_s27 }
 0x2e6   : > { %1293 = vrot.lane.b32.xlu1 %v1116_v40, %s3081_s18 }
 0x2e7   : > { %1331 = vrot.lane.b32.xlu0 %v1083_v36, %s3082_s27 }
 0x2ea   : > { %1365 = vrot.lane.b32.xlu1 %v1081_v33, %s3083_s29 }
 0x2eb   : > { %1367 = vrot.lane.b32.xlu0 %v1113_v37, %s3083_s29 }
 0x2ee   : > { %1333 = vrot.lane.b32.xlu1 %v1116_v40, %s3082_s27 }
 0x2ef   : > { %1371 = vrot.lane.b32.xlu0 %v1083_v36, %s3083_s29 }
 0x2f2   : > { %1363 = vrot.lane.b32.xlu1 %v1111_v39, %s3083_s29 }
 0x2f3   : > { %1369 = vrot.lane.b32.xlu0 %v2787_v29, %s3083_s29 }
 0x2f6   : > { %1373 = vrot.lane.b32.xlu1 %v1116_v40, %s3083_s29 }
 0x2f7   : > { %1407 = vrot.lane.b32.xlu0 %v1113_v37, %s2359_s26 }
 0x2fa   : > { %1405 = vrot.lane.b32.xlu1 %v1081_v33, %s2359_s26 }
 0x2fb   : > { %1411 = vrot.lane.b32.xlu0 %v1083_v36, %s2359_s26 }
 0x2fe   : > { %1403 = vrot.lane.b32.xlu1 %v1111_v39, %s2359_s26 }
 0x2ff   : > { %1409 = vrot.lane.b32.xlu0 %v2787_v29, %s2359_s26 }
 0x302   : > { %1413 = vrot.lane.b32.xlu1 %v1116_v40, %s2359_s26  ;;  %s2124_s26 = smul.u32 1536, %s2421_s25  ;;  %s1899_s25 = scalar_lea.sflag [#allocation7], %s2539_s16 }
 0x303   : > { %1768 = vperm.xlu0 %2198, %v1758_v42  }
 0x304   : > { %s3001_s19 = scalar_lea.hbm %s3059_s6, %s2124_s26 }
 0x306   : > { %1763 = vperm.xlu1 %2199, %v1757_v43  }
 0x307   : > { %1778 = vperm.xlu0 %2198, %v1760_v44  }
 0x30a   : > { %1773 = vperm.xlu1 %2199, %v1759_v45  }
 0x30b   : > { %1819 = vrot.lane.b32.xlu0 %v1794_v46, %s2355_s7 }
 0x30e   : > { %1817 = vrot.lane.b32.xlu1 %v1793_v47, %s2355_s7 }
 0x30f   : > { %1823 = vrot.lane.b32.xlu0 %v1796_v48, %s2355_s7 }
 0x312   : > { %1821 = vrot.lane.b32.xlu1 %v1795_v49, %s2355_s7 }
 0x313   : > { %1827 = vrot.lane.b32.xlu0 %v1798_v50, %s2355_s7 }
 0x315   : > { %v1128_v53 = vpop.permute.xlu0 %1127 }
 0x316   : > { %1147 = vst.msk [vmem:[#allocation3 + $0x40] sm:$0xff] %vm319_vm1, %v1128_v53  ;;  %1825 = vrot.lane.b32.xlu1 %v1797_v51, %s2355_s7 }
 0x317   : > { %1831 = vrot.lane.b32.xlu0 %v1800_v52, %s2355_s7 }
 0x318   : > { %v1124_v55 = vpop.permute.xlu1 %1123 }
 0x319   : > { %v1168_v57 = vpop.permute.xlu0 %1167 }
 0x31a   : > { %1187 = vst.msk [vmem:[#allocation3 + $0x70] sm:$0xff] %vm319_vm1, %v1168_v57  ;;  %1829 = vrot.lane.b32.xlu1 %v1799_v54, %s2355_s7 }
 0x31b   : > { %1835 = vrot.lane.b32.xlu0 %v1802_v56, %s2355_s7 }
 0x31c   : > { %v1164_v59 = vpop.permute.xlu1 %1163 }
 0x31d   : > { %v1208_v61 = vpop.permute.xlu0 %1207 }
 0x31e   : > { %1227 = vst.msk [vmem:[#allocation3 + $0xa0] sm:$0xff] %vm319_vm1, %v1208_v61  ;;  %1833 = vrot.lane.b32.xlu1 %v1801_v58, %s2355_s7 }
 0x31f   : > { %1839 = vrot.lane.b32.xlu0 %v1804_v60, %s2355_s7  ;;  %v1447_v60 = vld [vmem:[#allocation3 + $0x40] sm:$0xff] }
 0x320   : > { %v1204_v63 = vpop.permute.xlu1 %1203 }
 0x321   : > { %v1248_v0 = vpop.permute.xlu0 %1247 }
 0x322   : > { %1267 = vst.msk [vmem:[#allocation3 + $0xd0] sm:$0xff] %vm319_vm1, %v1248_v0  ;;  %1837 = vrot.lane.b32.xlu1 %v1803_v62, %s2355_s7  ;;  %s2964_s7 = scalar_lea.vmem [#allocation10], %s3084_s15 }
 0x323   : > { %s1912_s18 = sshll.u32 %s2964_s7, 4  ;;  %s3003_s18 = int_to_ptr.vmem [resolvable:$true] %s1912_s18 }
 0x324   : > { %v1244_v1 = vpop.permute.xlu1 %1243  ;;  %s2274_s10 = scalar_lea.vmem %s3003_s18, 1536  ;;  %p2281_p10 = scmp.lt.s32.totalorder %s3003_s18, %s2279_s8 }
 0x325   : > { %v1130_v2 = vpop.permute.xlu0 %1129  ;;  %p2275_p4 = scmp.ne.s32.totalorder %s3003_s18, %s2274_s10  ;;  %p2282_p13 = scmp.lt.s32.totalorder %s2280_s11, %s2274_s10 }
 0x327   : > { %p2276_p6 = pnand %p2275_p4, %p2491_p12  ;;  %p2283_p3 = por %p2282_p13, %p2281_p10 }
 0x328   : > { %v1126_v3 = vpop.permute.xlu1 %1125 }
 0x329   : > { %v1135_v4 = vsel %vm348_vm2, %v1124_v55, %v1126_v3  ;;  %v1136_v5 = vsel %vm348_vm2, %v1126_v3, %v1128_v53  ;;  %v1170_v6 = vpop.permute.xlu0 %1169  ;;  %v1465_v7 = vld [vmem:[#allocation3 + $0xd0] sm:$0xff]  ;;  %v1444_v55 = vld [vmem:[#allocation3 + $0x28] sm:$0xff]  ;;  %p2277_p8 = pneg %p2276_p6 }
 0x32a   : > { %2057 = vmatprep.subr.bf16.mxu0 %v1465_v7  ;;  %1533 = vmatprep.subr.bf16.mxu1 %v1136_v5  ;;  %v1453_v7 = vld [vmem:[#allocation3 + $0x70] sm:$0xff] }
 0x32b   : > { %2058 = vmatpush3.bf16.msra.mxu0 %v1441_v9  ;;  %1534 = vmatpush1.bf16.msra.mxu1 %v1135_v4  ;;  %p2284_p7 = pnand %p2283_p3, %p2277_p8 }
 0x32c   : > { %v1166_v10 = vpop.permute.xlu1 %1165 }
 0x32d   : > { %v1175_v11 = vsel %vm389_vm3, %v1164_v59, %v1166_v10  ;;  %v1176_v14 = vsel %vm389_vm3, %v1166_v10, %v1168_v57  ;;  %v1210_v15 = vpop.permute.xlu0 %1209 }
 0x330   : > { %v1206_v17 = vpop.permute.xlu1 %1205 }
 0x331   : > { %v1215_v18 = vsel %vm430_vm4, %v1204_v63, %v1206_v17  ;;  %v1216_v19 = vsel %vm430_vm4, %v1206_v17, %v1208_v61  ;;  %v1132_v20 = vpop.permute.xlu0 %1131 }
 0x332   : > { %v1137_v8 = vsel %vm348_vm2, %v1130_v2, %v1132_v20 }
 0x334   : > { %v1246_v22 = vpop.permute.xlu1 %1245 }
 0x335   : > { %v1255_v23 = vsel %vm471_vm5, %v1244_v1, %v1246_v22  ;;  %v1256_v24 = vsel %vm471_vm5, %v1246_v22, %v1248_v0  ;;  %v1250_v25 = vpop.permute.xlu0 %1249 }
 0x338   : > { %v1134_v26 = vpop.permute.xlu1 %1133 }
 0x339   : > { %v1138_v27 = vsel %vm348_vm2, %v1132_v20, %v1134_v26  ;;  %1150 = vst.msk [vmem:[#allocation3 + $0x58] sm:$0xff] %vm319_vm1, %v1134_v26  ;;  %v1172_v28 = vpop.permute.xlu0 %1171  ;;  %v2211_v20 = vld [vmem:[#allocation8 + $0x1c] ss:$12 sps:$4 sm:$0xff]  }
 0x33a   : > { %v1177_v12 = vsel %vm389_vm3, %v1170_v6, %v1172_v28  ;;  %1535 = vmatprep.subr.bf16.mxu1 %v1138_v27 }
 0x33b   : > { %1536 = vmatpush1.bf16.msra.mxu1 %v1137_v8 }
 0x33c   : > { %v1286_v13 = vpop.permute.xlu1 %1285  ;;  %1537 = vmatprep.subr.bf16.mxu1 %v1176_v14 }
 0x33d   : > { %v1288_v16 = vpop.permute.xlu0 %1287 }
 0x33e   : > { %v1296_v29 = vsel %vm512_vm6, %v1286_v13, %v1288_v16  ;;  %1307 = vst.msk [vmem:[#allocation3 + $0x100] sm:$0xff] %vm319_vm1, %v1288_v16 }
 0x33f   : > { %1538 = vmatpush1.bf16.msra.mxu1 %v1175_v11 }
 0x340   : > { %v1174_v30 = vpop.permute.xlu1 %1173  ;;  %v1450_v2 = vld [vmem:[#allocation3 + $0x58] sm:$0xff] }
 0x341   : > { %v1178_v31 = vsel %vm389_vm3, %v1172_v28, %v1174_v30  ;;  %1190 = vst.msk [vmem:[#allocation3 + $0x88] sm:$0xff] %vm319_vm1, %v1174_v30  ;;  %v1212_v32 = vpop.permute.xlu0 %1211 }
 0x342   : > { %v1217_v33 = vsel %vm430_vm4, %v1210_v15, %v1212_v32  ;;  %1539 = vmatprep.subr.bf16.mxu1 %v1178_v31 }
 0x343   : > { %1540 = vmatpush1.bf16.msra.mxu1 %v1177_v12 }
 0x344   : > { %v1284_v34 = vpop.permute.xlu1 %1283  ;;  %1541 = vmatprep.subr.bf16.mxu1 %v1216_v19  ;;  %v2208_v19 = vld [vmem:[#allocation8] ss:$12 sps:$4 sm:$0xff]  }
 0x345   : > { %v1295_v35 = vsel %vm512_vm6, %v1284_v34, %v1286_v13  ;;  %v1290_v36 = vpop.permute.xlu0 %1289  ;;  %v1471_v57 = vld [vmem:[#allocation3 + $0x100] sm:$0xff]  ;;  %v2215_v34 = vld [vmem:[#allocation8 + $0x20] ss:$12 sps:$4 sm:$0xff]  }
 0x347   : > { %1542 = vmatpush1.bf16.msra.mxu1 %v1215_v18 }
 0x348   : > { %v1214_v37 = vpop.permute.xlu1 %1213  ;;  %v1456_v17 = vld [vmem:[#allocation3 + $0x88] sm:$0xff] }
 0x349   : > { %v1218_v38 = vsel %vm430_vm4, %v1212_v32, %v1214_v37  ;;  %1230 = vst.msk [vmem:[#allocation3 + $0xb8] sm:$0xff] %vm319_vm1, %v1214_v37  ;;  %v1252_v39 = vpop.permute.xlu0 %1251  ;;  %v2214_v32 = vld [vmem:[#allocation8 + $0x8] ss:$12 sps:$4 sm:$0xff]  }
 0x34a   : > { %v1257_v40 = vsel %vm471_vm5, %v1250_v25, %v1252_v39  ;;  %1543 = vmatprep.subr.bf16.mxu1 %v1218_v38 }
 0x34b   : > { %1544 = vmatpush1.bf16.msra.mxu1 %v1217_v33 }
 0x34c   : > { %v1326_v41 = vpop.permute.xlu1 %1325  ;;  %1545 = vmatprep.subr.bf16.mxu1 %v1256_v24  ;;  %v1459_v24 = vld [vmem:[#allocation3 + $0xa0] sm:$0xff] }
 0x34d   : > { %v1328_v42 = vpop.permute.xlu0 %1327 }
 0x34e   : > { %v1336_v43 = vsel %vm553_vm7, %v1326_v41, %v1328_v42  ;;  %1347 = vst.msk [vmem:[#allocation3 + $0x130] sm:$0xff] %vm319_vm1, %v1328_v42 }
 0x34f   : > { %1546 = vmatpush1.bf16.msra.mxu1 %v1255_v23 }
 0x350   : > { %v1254_v44 = vpop.permute.xlu1 %1253  ;;  %v1462_v12 = vld [vmem:[#allocation3 + $0xb8] sm:$0xff] }
 0x351   : > { %v1258_v45 = vsel %vm471_vm5, %v1252_v39, %v1254_v44  ;;  %1270 = vst.msk [vmem:[#allocation3 + $0xe8] sm:$0xff] %vm319_vm1, %v1254_v44  ;;  %v1292_v46 = vpop.permute.xlu0 %1291 }
 0x352   : > { %v1297_v47 = vsel %vm512_vm6, %v1290_v36, %v1292_v46  ;;  %1547 = vmatprep.subr.bf16.mxu1 %v1258_v45 }
 0x353   : > { %1548 = vmatpush1.bf16.msra.mxu1 %v1257_v40 }
 0x354   : > { %v1324_v48 = vpop.permute.xlu1 %1323  ;;  %1549 = vmatprep.subr.bf16.mxu1 %v1296_v29  ;;  %v2213_v29 = vld [vmem:[#allocation8 + $0x18] ss:$12 sps:$4 sm:$0xff]  }
 0x355   : > { %v1335_v49 = vsel %vm553_vm7, %v1324_v48, %v1326_v41  ;;  %v1330_v50 = vpop.permute.xlu0 %1329  ;;  %v1477_v3 = vld [vmem:[#allocation3 + $0x130] sm:$0xff] }
 0x357   : > { %1550 = vmatpush1.bf16.msra.mxu1 %v1295_v35 }
 0x358   : > { %v1294_v51 = vpop.permute.xlu1 %1293  ;;  %v1468_v52 = vld [vmem:[#allocation3 + $0xe8] sm:$0xff] }
 0x359   : > { %v1298_v53 = vsel %vm512_vm6, %v1292_v46, %v1294_v51  ;;  %1310 = vst.msk [vmem:[#allocation3 + $0x118] sm:$0xff] %vm319_vm1, %v1294_v51  ;;  %v1332_v54 = vpop.permute.xlu0 %1331  ;;  %2059 = vmatprep.subr.bf16.mxu0 %v1468_v52 }
 0x35a   : > { %v1337_v56 = vsel %vm553_vm7, %v1330_v50, %v1332_v54  ;;  %2060 = vmatpush3.bf16.msra.mxu0 %v1444_v55  ;;  %1551 = vmatprep.subr.bf16.mxu1 %v1298_v53 }
 0x35b   : > { %2061 = vmatprep.subr.bf16.mxu0 %v1471_v57  ;;  %1552 = vmatpush1.bf16.msra.mxu1 %v1297_v47 }
 0x35c   : > { %v1366_v58 = vpop.permute.xlu1 %1365  ;;  %1553 = vmatprep.subr.bf16.mxu1 %v1336_v43 }
 0x35d   : > { %v1368_v59 = vpop.permute.xlu0 %1367 }
 0x35e   : > { %v1376_v61 = vsel %vm594_vm8, %v1366_v58, %v1368_v59  ;;  %1387 = vst.msk [vmem:[#allocation3 + $0x160] sm:$0xff] %vm319_vm1, %v1368_v59  ;;  %2062 = vmatpush3.bf16.msra.mxu0 %v1447_v60 }
 0x35f   : > { %1554 = vmatpush1.bf16.msra.mxu1 %v1335_v49 }
 0x360   : > { %v1334_v62 = vpop.permute.xlu1 %1333  ;;  %v1474_v63 = vld [vmem:[#allocation3 + $0x118] sm:$0xff] }
 0x361   : > { %v1338_v0 = vsel %vm553_vm7, %v1332_v54, %v1334_v62  ;;  %1350 = vst.msk [vmem:[#allocation3 + $0x148] sm:$0xff] %vm319_vm1, %v1334_v62  ;;  %v1372_v1 = vpop.permute.xlu0 %1371  ;;  %2063 = vmatprep.subr.bf16.mxu0 %v1474_v63 }
 0x362   : > { %2064 = vmatpush3.bf16.msra.mxu0 %v1450_v2  ;;  %1555 = vmatprep.subr.bf16.mxu1 %v1338_v0 }
 0x363   : > { %2065 = vmatprep.subr.bf16.mxu0 %v1477_v3  ;;  %1556 = vmatpush1.bf16.msra.mxu1 %v1337_v56 }
 0x364   : > { %v1364_v4 = vpop.permute.xlu1 %1363  ;;  %1557 = vmatprep.subr.bf16.mxu1 %v1376_v61 }
 0x365   : > { %v1375_v5 = vsel %vm594_vm8, %v1364_v4, %v1366_v58  ;;  %v1370_v6 = vpop.permute.xlu0 %1369  ;;  %v1483_v18 = vld [vmem:[#allocation3 + $0x160] sm:$0xff] }
 0x366   : > { %v1377_v9 = vsel %vm594_vm8, %v1370_v6, %v1372_v1  ;;  %2066 = vmatpush3.bf16.msra.mxu0 %v1453_v7 }
 0x367   : > { %1558 = vmatpush1.bf16.msra.mxu1 %v1375_v5 }
 0x368   : > { %v1374_v10 = vpop.permute.xlu1 %1373  ;;  %v1480_v11 = vld [vmem:[#allocation3 + $0x148] sm:$0xff] }
 0x369   : > { %v1378_v14 = vsel %vm594_vm8, %v1372_v1, %v1374_v10  ;;  %1390 = vst.msk [vmem:[#allocation3 + $0x178] sm:$0xff] %vm319_vm1, %v1374_v10  ;;  %v1408_v15 = vpop.permute.xlu0 %1407  ;;  %2067 = vmatprep.subr.bf16.mxu0 %v1480_v11 }
 0x36a   : > { %1427 = vst.msk [vmem:[#allocation3 + $0x190] sm:$0xff] %vm319_vm1, %v1408_v15  ;;  %2068 = vmatpush3.bf16.msra.mxu0 %v1456_v17  ;;  %1559 = vmatprep.subr.bf16.mxu1 %v1378_v14 }
 0x36b   : > { %2069 = vmatprep.subr.bf16.mxu0 %v1483_v18  ;;  %1560 = vmatpush1.bf16.msra.mxu1 %v1377_v9 }
 0x36c   : > { %v1406_v8 = vpop.permute.xlu1 %1405 }
 0x36d   : > { %v1416_v22 = vsel %vm635_vm9, %v1406_v8, %v1408_v15  ;;  %v1412_v23 = vpop.permute.xlu0 %1411 }
 0x36e   : > { %2070 = vmatpush3.bf16.msra.mxu0 %v1459_v24  ;;  %1562 = vmatmul.mubr.bf16.vlgmr.msra.gmra.mrb[12].mxu1 %v2208_v19 }
 0x36f   : > { %1582 = vmatprep.subr.bf16.mxu1 %v1416_v22  ;;  %1571 = vmatprep.mubr.bf16.mxu1 %v2211_v20 }
 0x370   : > { %v1404_v25 = vpop.permute.xlu1 %1403  ;;  %v1486_v26 = vld [vmem:[#allocation3 + $0x178] sm:$0xff] }
 0x371   : > { %v1415_v27 = vsel %vm635_vm9, %v1404_v25, %v1406_v8  ;;  %v1410_v28 = vpop.permute.xlu0 %1409  ;;  %2071 = vmatprep.subr.bf16.mxu0 %v1486_v26  ;;  %v1489_v13 = vld [vmem:[#allocation3 + $0x190] sm:$0xff] }
 0x372   : > { %v1417_v16 = vsel %vm635_vm9, %v1410_v28, %v1412_v23  ;;  %2072 = vmatpush3.bf16.msra.mxu0 %v1462_v12  ;;  %1583 = vmatpush1.bf16.msra.mxu1 %v1415_v27 }
 0x373   : > { %2097 = vmatprep.subr.bf16.mxu0 %v1489_v13 }
 0x374   : > { %v1414_v30 = vpop.permute.xlu1 %1413 }
 0x375   : > { %v1418_v31 = vsel %vm635_vm9, %v1412_v23, %v1414_v30  ;;  %1430 = vst.msk [vmem:[#allocation3 + $0x1a8] sm:$0xff] %vm319_vm1, %v1414_v30  ;;  %1668 = vmatmul.mubr.bf16.vlgmr.msra.gmra.mrb[8].mxu0 %v2208_v19 }
 0x376   : > { %2098 = vmatpush3.bf16.msra.mxu0 %v1489_v13  ;;  %1675 = vmatprep.mubr.bf16.mxu0 %v2211_v20 }
 0x377   : > { %1572 = vmatmul.mubr.bf16.gmra.mrb[16].mxu1 %v2213_v29  ;;  %1584 = vmatprep.subr.bf16.mxu1 %v1418_v31 }
 0x378   : > { %1585 = vmatpush1.bf16.msra.mxu1 %v1417_v16  ;;  %1614 = vmatprep.mubr.bf16.mxu1 %v2360_v21 }
 0x37c   : > { %v1492_v33 = vld [vmem:[#allocation3 + $0x1a8] sm:$0xff] }
 0x37d   : > { %1676 = vmatmul.mubr.bf16.gmra.mrb[12].mxu0 %v2213_v29  ;;  %2099 = vmatprep.subr.bf16.mxu0 %v1492_v33 }
 0x37e   : > { %2100 = vmatpush3.bf16.msra.mxu0 %v1492_v33  ;;  %2101 = vmatprep.mubr.msk.bf16.mxu0 %vm744_vm10, %v2214_v32 }
 0x37f   : > { %2018 = vmatmul.mubr.msk.bf16.vlgmr.msra.gmra.mrb[12].mxu1 %vm744_vm10, %v2214_v32 }
 0x380   : > { %1624 = vmatprep.mubr.bf16.mxu1 %v2360_v21 }
 0x382   : > { %v2940_v36 = vpop.permute.xlu0 %1768 }
 0x385   : > { %2102 = vmatmul.mubr.msk.bf16.vlgmr.msra.gmra.mrb[16].mxu0 %vm744_vm10, %v2215_v34  ;;  %v2938_v35 = vpop.permute.xlu1 %1763 }
 0x386   : > { %v2944_v38 = vpop.permute.xlu0 %1778 }
 0x387   : > { %2019 = vmatmul.mubr.msk.bf16.gmra.mrb[16].mxu1 %vm744_vm10, %v2215_v34 }
 0x389   : > { %v2942_v37 = vpop.permute.xlu1 %1773 }
 0x38a   : > { %v1820_v40 = vpop.permute.xlu0 %1819 }
 0x38d   : > { %v1818_v39 = vpop.permute.xlu1 %1817 }
 0x38e   : > { %v1824_v42 = vpop.permute.xlu0 %1823  ;;  %v1842_v56 = vsel %vm471_vm5, %v1818_v39, %v1820_v40 }
 0x391   : > { %v2946_v41 = vpop.permute.xlu1 %1821 }
 0x392   : > { %v2948_v21 = vpop.permute.xlu0 %1827  ;;  %v1843_v61 = vsel %vm471_vm5, %v1820_v40, %v2946_v41 }
 0x395   : > { %v1826_v43 = vpop.permute.xlu1 %1825 }
 0x396   : > { %v1832_v50 = vpop.permute.xlu0 %1831  ;;  %v1844_v3 = vsel %vm471_vm5, %v1824_v42, %v1826_v43  ;;  %v1845_v7 = vsel %vm471_vm5, %v1826_v43, %v2948_v21 }
 0x399   : > { %v1830_v48 = vpop.permute.xlu1 %1829 }
 0x39a   : > { %v1836_v55 = vpop.permute.xlu0 %1835  ;;  %v1846_v27 = vsel %vm471_vm5, %v1830_v48, %v1832_v50 }
 0x39d   : > { %v2950_v53 = vpop.permute.xlu1 %1833 }
 0x39e   : > { %v1840_v23 = vpop.permute.xlu0 %1839  ;;  %v1847_v30 = vsel %vm471_vm5, %v1832_v50, %v2950_v53 }
 0x3a1   : > { %v1838_v19 = vpop.permute.xlu1 %1837 }
 0x3a2   : > { %v1848_v34 = vsel %vm471_vm5, %v1836_v55, %v1838_v19  ;;  %v1849_v43 = vsel %vm471_vm5, %v1838_v19, %v1840_v23 }
 0x448   : > { %v2073_v44 = vpop.f32.mrb[8].mxu0 }
 0x449   : > { %v2074_v45 = vpop.f32.mrb[9].mxu0 }
 0x44a   : > { %v2075_v46 = vadd.f32 %v2074_v45, %v2073_v44  ;;  %v2076_v47 = vpop.f32.mrb[10].mxu0 }
 0x44b   : > { %v2077_v49 = vpop.f32.mrb[11].mxu0 }
 0x44c   : > { %v2078_v51 = vadd.f32 %v2077_v49, %v2076_v47 }
 0x450   : > { %v2079_v52 = vpop.f32.mrb[12].mxu0 }
 0x451   : > { %v2080_v54 = vpop.f32.mrb[13].mxu0 }
 0x452   : > { %v2081_v57 = vadd.f32 %v2080_v54, %v2079_v52  ;;  %v2082_v58 = vpop.f32.mrb[14].mxu0  ;;  %v1616_v59 = vpop.f32.mrb[12].mxu1 }
 0x453   : > { %v2083_v60 = vpop.f32.mrb[15].mxu0  ;;  %v1781_v62 = vadd.f32 %v2938_v35, %v1616_v59  ;;  %v1618_v63 = vpop.f32.mrb[13].mxu1 }
 0x454   : > { %v2084_v0 = vadd.f32 %v2083_v60, %v2082_v58  ;;  %v1782_v1 = vadd.f32 %v2938_v35, %v1618_v63  ;;  %v1620_v2 = vpop.f32.mrb[14].mxu1 }
 0x455   : > { %v1862_v4 = vadd.f32 %v1842_v56, %v1781_v62  ;;  %v1622_v5 = vpop.f32.mrb[15].mxu1  ;;  %v1784_v6 = vadd.f32 %v2940_v36, %v1620_v2 }
 0x456   : > { %v1863_v9 = vadd.f32 %v1843_v61, %v1782_v1  ;;  %v1785_v10 = vadd.f32 %v2940_v36, %v1622_v5 }
 0x457   : > { %v1874_v11 = vmax.f32 %v1862_v4, 0.0  ;;  %v1865_v14 = vadd.f32 %v1844_v3, %v1784_v6 }
 0x458   : > { %v2103_v15 = vpop.f32.mrb[16].mxu0  ;;  %v1875_v17 = vmax.f32 %v1863_v9, 0.0  ;;  %v1866_v18 = vadd.f32 %v1845_v7, %v1785_v10 }
 0x459   : > { %v1727_v20 = vadd.f32 %v2103_v15, %v2081_v57  ;;  %1886 = vst [vmem:[%s2964_s7] sm:$0xff] %v1874_v11  ;;  %v1718_v8 = vpop.f32.mrb[17].mxu0  ;;  %v1877_v22 = vmax.f32 %v1865_v14, 0.0 }
 0x45a   : > { %v1719_v24 = vadd.f32 %v2075_v46, %v1718_v8  ;;  %1887 = vst [vmem:[%s2964_s7 + $0x8] sm:$0xff] %v1875_v17  ;;  %v2104_v25 = vpop.f32.mrb[18].mxu0  ;;  %v1878_v26 = vmax.f32 %v1866_v18, 0.0  ;;  %v1626_v28 = vpop.f32.mrb[16].mxu1 }
 0x45b   : > { %1741 = vst.msk [vmem:[#allocation4 + $0x40] sm:$0xff] %vm319_vm1, %v1727_v20  ;;  %v1730_v12 = vadd.f32 %v2104_v25, %v2084_v0  ;;  %v1721_v13 = vpop.f32.mrb[19].mxu0  ;;  %1889 = vst [vmem:[%s2964_s7 + $0x18] sm:$0xff] %v1877_v22  ;;  %v1787_v16 = vadd.f32 %v2942_v37, %v1626_v28  ;;  %v1628_v29 = vpop.f32.mrb[17].mxu1 }
 0x45c   : > { %1735 = vst.msk [vmem:[#allocation4 + $0x10] sm:$0xff] %vm319_vm1, %v1719_v24  ;;  %v1722_v31 = vadd.f32 %v2078_v51, %v1721_v13  ;;  %1890 = vst [vmem:[%s2964_s7 + $0x20] sm:$0xff] %v1878_v26  ;;  %v1630_v32 = vpop.f32.mrb[18].mxu1  ;;  %v1788_v33 = vadd.f32 %v2942_v37, %v1628_v29 }
 0x45d   : > { %1744 = vst.msk [vmem:[#allocation4 + $0x58] sm:$0xff] %vm319_vm1, %v1730_v12  ;;  %v1868_v39 = vadd.f32 %v1846_v27, %v1787_v16  ;;  %v1632_v40 = vpop.f32.mrb[19].mxu1  ;;  %v1790_v42 = vadd.f32 %v2944_v38, %v1630_v32 }
 0x45e   : > { %1738 = vst.msk [vmem:[#allocation4 + $0x28] sm:$0xff] %vm319_vm1, %v1722_v31  ;;  %v1869_v44 = vadd.f32 %v1847_v30, %v1788_v33  ;;  %v1791_v45 = vadd.f32 %v2944_v38, %v1632_v40 }
 0x45f   : > { %v1880_v46 = vmax.f32 %v1868_v39, 0.0  ;;  %v1871_v47 = vadd.f32 %v1848_v34, %v1790_v42 }
 0x460   : > { %v1881_v48 = vmax.f32 %v1869_v44, 0.0  ;;  %v1872_v49 = vadd.f32 %v1849_v43, %v1791_v45 }
 0x461   : > { %1892 = vst [vmem:[%s2964_s7 + $0x30] sm:$0xff] %v1880_v46  ;;  %v1883_v50 = vmax.f32 %v1871_v47, 0.0 }
 0x462   : > { %v1753_v51 = vld [vmem:[#allocation4 + $0x40] sm:$0xff]  ;;  %1893 = vst [vmem:[%s2964_s7 + $0x38] sm:$0xff] %v1881_v48  ;;  %v1884_v52 = vmax.f32 %v1872_v49, 0.0 }
 0x463   : > { %v1747_v54 = vld [vmem:[#allocation4 + $0x10] sm:$0xff]  ;;  %v1789_v55 = vadd.f32 %v2942_v37, %v1753_v51  ;;  %1895 = vst [vmem:[%s2964_s7 + $0x48] sm:$0xff] %v1883_v50 }
 0x464   : > { %v1783_v56 = vadd.f32 %v2938_v35, %v1747_v54  ;;  %v1756_v57 = vld [vmem:[#allocation4 + $0x58] sm:$0xff]  ;;  %1896 = vst [vmem:[%s2964_s7 + $0x50] sm:$0xff] %v1884_v52 }
 0x465   : > { %v1750_v58 = vld [vmem:[#allocation4 + $0x28] sm:$0xff]  ;;  %v1870_v59 = vadd.f32 %v2950_v53, %v1789_v55  ;;  %v1792_v60 = vadd.f32 %v2944_v38, %v1756_v57 }
 0x466   : > { %v1864_v61 = vadd.f32 %v2946_v41, %v1783_v56  ;;  %v1786_v37 = vadd.f32 %v2940_v36, %v1750_v58 }
 0x467   : > { %v1882_v62 = vmax.f32 %v1870_v59, 0.0  ;;  %v1873_v35 = vadd.f32 %v1840_v23, %v1792_v60 }
 0x468   : > { %v1876_v63 = vmax.f32 %v1864_v61, 0.0  ;;  %v1867_v0 = vadd.f32 %v2948_v21, %v1786_v37 }
 0x469   : > { %1894 = vst.msk [vmem:[%s2964_s7 + $0x40] sm:$0xff] %vm319_vm1, %v1882_v62  ;;  %v1885_v53 = vmax.f32 %v1873_v35, 0.0 }
 0x46a   : > { %1888 = vst.msk [vmem:[%s2964_s7 + $0x10] sm:$0xff] %vm319_vm1, %v1876_v63  ;;  %v1879_v36 = vmax.f32 %v1867_v0, 0.0 }
 0x46b   : > { %1897 = vst.msk [vmem:[%s2964_s7 + $0x58] sm:$0xff] %vm319_vm1, %v1885_v53 }
 0x46c   : > { %1891 = vst.msk [vmem:[%s2964_s7 + $0x28] sm:$0xff] %vm319_vm1, %v1879_v36 }
 0x46d   : > { %2287 = shalt.err (!%p2284_p7)
}
 0x46e   : > { %s2288_s20 = scalar_lea.hbm %s3001_s19, 1536  ;;  %s2292_s15 = scalar_lea.hbm %s3059_s6, 3072 }
 0x46f   : > { %p2289_p9 = scmp.ne.s32.totalorder %s3001_s19, %s2288_s20  ;;  %p2293_p5 = scmp.lt.u32.totalorder %s3001_s19, %s3059_s6 }
 0x470   : > { %p2294_p11 = scmp.lt.u32.totalorder %s2292_s15, %s2288_s20  ;;  %p2296_p4 = scmp.lt.u32.totalorder %s2288_s20, %s3001_s19 }
 0x471   : > { %p2290_p2 = pnand %p2289_p9, %p2491_p12 }
 0x472   : > { %p2295_p1 = por %p2294_p11, %p2293_p5 }
 0x473   : > { %p2291_p0 = pneg %p2290_p2 }
 0x474   : > { %p2297_p6 = por %p2296_p4, %p2295_p1 }
 0x476   : > { %p2298_p8 = pnand %p2297_p6, %p2291_p0 }
 0x478   : > { %2301 = shalt.err (!%p2298_p8)
}
 0x479   : > { %s2363_s27 = smov 384   ;;  %s2364_s29 = smov 24  }
 0x47a   : > { %2131 = dma.vmem_to_hbm [thread:$0]  (%p2491_p12), %s3003_s18, 1536, %s3001_s19, %s1899_s25, %s2363_s27, %s2363_s27, %s2364_s29  }
 0x47b PF: > { %s1927_s10 = sand.u32 1, %s2332_s21   ;;  %p3085_p10 = scmp.ne.s32.totalorder %s3071_s28, 0 }
 0x47c   : > { %p3086_p13 = scmp.ge.s32.totalorder %s2344_s24, 2  ;;  %s1928_s30 = scalar_lea.sflag [#allocation7], %s1927_s10 }
 0x47e   : > { %p2142_p3 = pnand %p3086_p13, %p3085_p10 }
 0x480   : > { %2327 = dma.done.wait (!%p2142_p3), %s1928_s30, 1536  }
 0x481   : > { %2329 = vsyncadd (!%p2142_p3), %s1928_s30, 4294965760  ;;  %p20_p7 = scmp.ge.s32.totalorder %s2456_s9, 4   ;;  %s3087_s21 = smov %s2336_s22 }
 0x482   : > { %s3088_s22 = smov %s2340_s23  ;;  %s3089_s23 = smov %s2487_s13 }
 0x483   : > { %s3090_s24 = smov %s2456_s9  ;;  %22 = sbr.rel (!%p20_p7) target bundleno = 6 (0x6), region = 93 }
 0x48a   :  { %1933 = vsyncpa [#allocation6], 1 }
 0x48b   :  { %1935 = vsyncpa [#allocation6 + $0x1], 1 }
 0x48c   :  { %1936 = vsyncpa [#allocation9], 1 }
 0x48d   :  { %1937 = vsyncpa [#allocation7], 1 }
 0x48e   :  { %1939 = vsyncpa [#allocation7 + $0x1], 1 }

</bundles_post_ra>
